<compile_context>
chip_gen: v7x
topology: tpu7x:2x2x1
jax: 0.10.0
libtpu: 0.0.40
codegen_flags: <defaults>
</compile_context>

<pallas_src>
import functools

import jax
import jax.numpy as jnp
from jax.experimental import pallas as pl
from jax.experimental.pallas import tpu as pltpu

EPS = 1e-5


def _round_up(n, m):
    return ((n + m - 1) // m) * m


def _adaln_kernel(ss_ref, x_ref, o_ref, *, c_valid):
    # ss_ref : (2, Cp) f32  row 0 = scale = ln_w*(1+gamma), row 1 = shift = ln_b*(1+gamma)+beta
    # x_ref  : (tT, Cp)     time-tile of the current batch element (Cp multiple of 128)
    # o_ref  : (tT, Cp)
    x = x_ref[...].astype(jnp.float32)                       # (tT, Cp)
    t_rows, c_pad = x.shape
    inv_c = 1.0 / c_valid

    # Pass 1: mean over the channel (lane) axis. Padded lanes are zero, so the
    # sum already equals the true-C sum; divide by the true C.
    mean = jnp.sum(x, axis=-1, keepdims=True) * inv_c        # (tT, 1)

    # Pass 2: centered sum of squares (two-pass variance for accuracy).
    d = x - mean                                             # (tT, Cp)
    if c_pad != c_valid:
        # Padded lanes would contribute mean^2 to the centered sum; mask them.
        lane = jax.lax.broadcasted_iota(jnp.int32, (t_rows, c_pad), 1)
        d = jnp.where(lane < c_valid, d, 0.0)
    var = jnp.sum(d * d, axis=-1, keepdims=True) * inv_c     # (tT, 1)
    inv_std = jax.lax.rsqrt(var + EPS)

    scale = ss_ref[0:1, :]                                   # (1, Cp)
    shift = ss_ref[1:2, :]                                   # (1, Cp)
    o_ref[...] = (d * inv_std * scale + shift).astype(o_ref.dtype)


def ada_layer_norm(x, s, fc_w, fc_b, ln_w, ln_b, *, target_step_bytes=2 << 20):
    """x: (B, T, C), s: (B, style_dim). Returns (B, T, C) in x.dtype."""
    B, T, C = x.shape
    x_itemsize = jnp.dtype(x.dtype).itemsize

    # ---- lane-dense channel padding (unmasked full-width vst) ----
    Cp = _round_up(C, 128)

    # ---- generation-aware VMEM budget ----
    try:
        vmem_cap = int(getattr(pltpu.get_tpu_info(), "vmem_capacity_bytes",
                               64 * 1024 * 1024))
    except Exception:  # e.g. interpret mode / no chip visible at trace time
        vmem_cap = 64 * 1024 * 1024          # conservative: v7x per-TC VMEM
    budget = max(vmem_cap - 16 * 1024 * 1024, 8 * 1024 * 1024)

    # Honest per-step accounting: double-buffered x and out tiles, the packed
    # scale/shift block, the in-kernel f32 working set (x, d, d*d), and a
    # margin for compiler internal scratch.
    fixed_bytes = 2 * 2 * Cp * 4 + (2 << 20)
    per_row_bytes = Cp * (4 * x_itemsize + 3 * 4)

    def vmem_needed(tt):
        return fixed_bytes + tt * per_row_bytes

    # ---- adaptive time tile: >= target_step_bytes of x per step, VMEM-capped,
    #      padding-light (tile derived from an even split of T) ----
    tt_max = max(8, ((budget - fixed_bytes) // per_row_bytes) // 8 * 8)
    tT_target = max(8, min(target_step_bytes // (Cp * x_itemsize), tt_max) // 8 * 8)
    n_t = max(1, pl.cdiv(T, tT_target))
    tT = _round_up(pl.cdiv(T, n_t), 8)       # <= tT_target (both multiples of 8)
    Tp = n_t * tT

    pad_t, pad_c = Tp - T, Cp - C
    x_in = x
    if pad_t or pad_c:
        x_in = jnp.pad(x, ((0, 0), (0, pad_t), (0, pad_c)))

    # ---- style FC + affine folding in plain XLA (tiny: ~2*C*style_dim MACs) ----
    f32 = jnp.float32
    h = s.astype(f32) @ fc_w.astype(f32).T + fc_b.astype(f32)      # (B, 2C)
    gamma, beta = h[:, :C], h[:, C:]
    scale = ln_w.astype(f32)[None, :] * (1.0 + gamma)              # (B, C)
    shift = ln_b.astype(f32)[None, :] * (1.0 + gamma) + beta       # (B, C)
    ss = jnp.stack([scale, shift], axis=1)                         # (B, 2, C)
    if pad_c:
        ss = jnp.pad(ss, ((0, 0), (0, 0), (0, pad_c)))             # (B, 2, Cp)

    grid_spec = pltpu.PrefetchScalarGridSpec(
        num_scalar_prefetch=0,
        grid=(B, n_t),
        in_specs=[
            pl.BlockSpec((pl.Squeezed(), 2, Cp), lambda b, t: (b, 0, 0)),
            pl.BlockSpec((pl.Squeezed(), tT, Cp), lambda b, t: (b, t, 0)),
        ],
        out_specs=pl.BlockSpec((pl.Squeezed(), tT, Cp), lambda b, t: (b, t, 0)),
    )

    needed = vmem_needed(tT)
    compiler_params = pltpu.CompilerParams(
        dimension_semantics=("parallel", "parallel"),
        vmem_limit_bytes=int(min(max(needed, 32 * 1024 * 1024), budget)),
    )

    out = pl.pallas_call(
        functools.partial(_adaln_kernel, c_valid=C),
        out_shape=jax.ShapeDtypeStruct((B, Tp, Cp), x.dtype),
        grid_spec=grid_spec,
        compiler_params=compiler_params,
    )(ss, x_in)

    if pad_t or pad_c:
        out = out[:, :T, :C]
    return out


def ada_layer_norm_ref(x, s, fc_w, fc_b, ln_w, ln_b):
    """Pure-JAX reference mirroring the PyTorch forward."""
    h = s @ fc_w.T + fc_b                        # (B, 2C)
    C = x.shape[-1]
    gamma = h[:, :C][:, None, :]                 # (B, 1, C)
    beta = h[:, C:][:, None, :]                  # (B, 1, C)
    mean = jnp.mean(x, axis=-1, keepdims=True)
    var = jnp.mean((x - mean) ** 2, axis=-1, keepdims=True)
    xn = (x - mean) / jnp.sqrt(var + EPS)
    xn = xn * ln_w + ln_b
    return (1.0 + gamma) * xn + beta


def _make_params(key, C, S, dtype=jnp.float32):
    k_w, k_b = jax.random.split(key)
    fc_w = jax.random.normal(k_w, (2 * C, S), dtype=dtype) * 0.02
    fc_b = jax.random.normal(k_b, (2 * C,), dtype=dtype) * 0.02
    ln_w = jnp.ones((C,), dtype=dtype)            # PyTorch LayerNorm default init
    ln_b = jnp.zeros((C,), dtype=dtype)
    return fc_w, fc_b, ln_w, ln_b


if __name__ == "__main__":
    key = jax.random.PRNGKey(0)
    k1, k2, k3, k4 = jax.random.split(key, 4)

    # Case 1: lane-aligned shapes (fast path, no padding).
    B, T, C, S = 2, 256, 256, 128
    x = jax.random.normal(k1, (B, T, C), dtype=jnp.float32)
    s = jax.random.normal(k2, (B, S), dtype=jnp.float32)
    fc_w, fc_b, ln_w, ln_b = _make_params(k3, C, S)
    out = jax.block_until_ready(ada_layer_norm(x, s, fc_w, fc_b, ln_w, ln_b))
    ref = ada_layer_norm_ref(x, s, fc_w, fc_b, ln_w, ln_b)
    assert out.shape == (B, T, C)
    assert jnp.allclose(out, ref, atol=1e-4, rtol=1e-4), "mismatch (aligned case)"

    # Case 2: awkward T (not multiple of 8) and C (not multiple of 128),
    # exercising the pad/mask/slice path.
    B2, T2, C2, S2 = 2, 77, 200, 96
    kx, ks, kp, _ = jax.random.split(k4, 4)
    x2 = jax.random.normal(kx, (B2, T2, C2), dtype=jnp.float32)
    s2 = jax.random.normal(ks, (B2, S2), dtype=jnp.float32)
    fc_w2, fc_b2, ln_w2, ln_b2 = _make_params(kp, C2, S2)
    out2 = jax.block_until_ready(ada_layer_norm(x2, s2, fc_w2, fc_b2, ln_w2, ln_b2))
    ref2 = ada_layer_norm_ref(x2, s2, fc_w2, fc_b2, ln_w2, ln_b2)
    assert out2.shape == (B2, T2, C2)
    assert jnp.allclose(out2, ref2, atol=1e-4, rtol=1e-4), "mismatch (padded case)"

    print("KERNEL_OK")
</pallas_src>

<mosaic_0001>
module attributes {stable_mosaic.version = 11 : i64} {
  func.func @_adaln_kernel(%arg0: i32, %arg1: i32, %arg2: memref<1x2x256xf32, #tpu.memory_space<vmem>>, %arg3: memref<1x256x256xf32, #tpu.memory_space<vmem>>, %arg4: memref<1x256x256xf32, #tpu.memory_space<vmem>>) attributes {dimension_semantics = [#tpu.dimension_semantics<parallel>, #tpu.dimension_semantics<parallel>], iteration_bounds = array<i64: 2, 1>, scalar_prefetch = 0 : i64, scratch_operands = 0 : i64, tpu.core_type = #tpu.core_type<tc>, window_params = [{transform_indices = @transform_0, window_bounds = array<i64: 1, 2, 256>}, {transform_indices = @transform_1, window_bounds = array<i64: 1, 256, 256>}, {transform_indices = @transform_2, window_bounds = array<i64: 1, 256, 256>}]} {
    %c0 = arith.constant 0 : index
    %c0_0 = arith.constant 0 : index
    %c0_1 = arith.constant 0 : index
    %0 = vector.load %arg3[%c0, %c0_0, %c0_1] : memref<1x256x256xf32, #tpu.memory_space<vmem>>, vector<1x256x256xf32>
    %1 = vector.shape_cast %0 : vector<1x256x256xf32> to vector<256x256xf32>
    %cst = arith.constant dense<0.000000e+00> : vector<256xf32>
    %2 = vector.multi_reduction <add>, %1, %cst [1] : vector<256x256xf32> to vector<256xf32>
    %3 = vector.shape_cast %2 : vector<256xf32> to vector<256x1xf32>
    %cst_2 = arith.constant 3.906250e-03 : f32
    %4 = vector.broadcast %cst_2 : f32 to vector<256x1xf32>
    %5 = arith.mulf %3, %4 : vector<256x1xf32>
    %6 = vector.broadcast %5 : vector<256x1xf32> to vector<256x256xf32>
    %7 = arith.subf %1, %6 : vector<256x256xf32>
    %8 = arith.mulf %7, %7 : vector<256x256xf32>
    %cst_3 = arith.constant dense<0.000000e+00> : vector<256xf32>
    %9 = vector.multi_reduction <add>, %8, %cst_3 [1] : vector<256x256xf32> to vector<256xf32>
    %10 = vector.shape_cast %9 : vector<256xf32> to vector<256x1xf32>
    %cst_4 = arith.constant 3.906250e-03 : f32
    %11 = vector.broadcast %cst_4 : f32 to vector<256x1xf32>
    %12 = arith.mulf %10, %11 : vector<256x1xf32>
    %cst_5 = arith.constant 9.99999974E-6 : f32
    %13 = vector.broadcast %cst_5 : f32 to vector<256x1xf32>
    %14 = arith.addf %12, %13 : vector<256x1xf32>
    %15 = math.rsqrt %14 : vector<256x1xf32>
    %c0_6 = arith.constant 0 : index
    %c0_7 = arith.constant 0 : index
    %c0_8 = arith.constant 0 : index
    %16 = vector.load %arg2[%c0_6, %c0_7, %c0_8] : memref<1x2x256xf32, #tpu.memory_space<vmem>>, vector<1x1x256xf32>
    %17 = vector.shape_cast %16 : vector<1x1x256xf32> to vector<1x256xf32>
    %c0_9 = arith.constant 0 : index
    %c1 = arith.constant 1 : index
    %c0_10 = arith.constant 0 : index
    %18 = vector.load %arg2[%c0_9, %c1, %c0_10] : memref<1x2x256xf32, #tpu.memory_space<vmem>>, vector<1x1x256xf32>
    %19 = vector.shape_cast %18 : vector<1x1x256xf32> to vector<1x256xf32>
    %20 = vector.broadcast %15 : vector<256x1xf32> to vector<256x256xf32>
    %21 = arith.mulf %7, %20 : vector<256x256xf32>
    %22 = vector.broadcast %17 : vector<1x256xf32> to vector<256x256xf32>
    %23 = arith.mulf %21, %22 : vector<256x256xf32>
    %24 = vector.broadcast %19 : vector<1x256xf32> to vector<256x256xf32>
    %25 = arith.addf %23, %24 : vector<256x256xf32>
    %c0_11 = arith.constant 0 : index
    %c0_12 = arith.constant 0 : index
    %c0_13 = arith.constant 0 : index
    %26 = vector.load %arg4[%c0_11, %c0_12, %c0_13] : memref<1x256x256xf32, #tpu.memory_space<vmem>>, vector<1x256x256xf32>
    %27 = vector.shape_cast %26 : vector<1x256x256xf32> to vector<256x256xf32>
    %28 = vector.shape_cast %25 : vector<256x256xf32> to vector<1x256x256xf32>
    tpu.vector_store %arg4[%c0_11, %c0_12, %c0_13], %28 {strides = array<i32>} : memref<1x256x256xf32, #tpu.memory_space<vmem>>, vector<1x256x256xf32>,
    return
  }
  func.func @transform_0(%arg0: i32, %arg1: i32) -> (i32, i32, i32) {
    %c0_i32 = arith.constant 0 : i32
    %c0_i32_0 = arith.constant 0 : i32
    %c0_i32_1 = arith.constant 0 : i32
    return %arg0, %c0_i32, %c0_i32_0 : i32, i32, i32
  }
  func.func @transform_1(%arg0: i32, %arg1: i32) -> (i32, i32, i32) {
    %c0_i32 = arith.constant 0 : i32
    %c0_i32_0 = arith.constant 0 : i32
    return %arg0, %arg1, %c0_i32 : i32, i32, i32
  }
  func.func @transform_2(%arg0: i32, %arg1: i32) -> (i32, i32, i32) {
    %c0_i32 = arith.constant 0 : i32
    %c0_i32_0 = arith.constant 0 : i32
    return %arg0, %arg1, %c0_i32 : i32, i32, i32
  }
}

</mosaic_0001>

<bundles_post_ra>
// kernel: tpu_custom_call.1
= control target key start
LH: loop header
LB: loop body
LE: loop exit
PB: predicated region body
PF: predicated region fallthrough
CT: control target
= control target key end

     0   :  { %7 = vsyncpa [#allocation3], 0  ;;  %s2547_s0 = inlined_call_operand.hbm [shape: f32[2,2,256], index: 0, kind: input, shape index: {}]   ;;  %s2548_s1 = inlined_call_operand.hbm [shape: f32[2,256,256], index: 1, kind: input, shape index: {}]   ;;  %s2549_s2 = inlined_call_operand.hbm [shape: f32[2,256,256], index: 2, kind: output, shape index: {}]  }
   0x1   :  { %9 = vsyncpa [#allocation3 + $0x1], 0 }
   0x2   :  { %10 = vsyncpa [#allocation6], 0 }
   0x3   :  { %12 = vsyncpa [#allocation6 + $0x1], 0 }
   0x4   :  { %13 = vsyncpa [#allocation4], 0 }
   0x5   :  { %15 = vsyncpa [#allocation4 + $0x1], 0  ;;  %s1469_s9 = smov 0   ;;  %s1471_s10 = smov 0  }
   0x6   :  { %s1473_s11 = smov 0   ;;  %s1475_s12 = smov 0  }
   0x7   :  { %s1477_s13 = smov 0   ;;  %s1479_s14 = smov 0  }
   0x8 LB: > { %s1141_s15 = sadd.s32 4294967295, %s1445_s14   ;;  %s1142_s16 = sadd.s32 4294967294, %s1445_s14   ;;  %s1445_s14 = sphi %s1479_s14, %s21_s14   ;;  %s1441_s13 = sphi %s1477_s13, %s2673_s13   ;;  %s1437_s12 = sphi %s1475_s12, %s2672_s12   ;;  %s1433_s11 = sphi %s1473_s11, %s2671_s11   ;;  %s1429_s10 = sphi %s1471_s10, %s2670_s10   ;;  %s1425_s9 = sphi %s1469_s9, %s2669_s9  }
   0x9   : > { %s33_s17 = sadd.s32 1, %s1441_s13  ;;  %s40_s18 = sadd.s32 1, %s1433_s11 }
   0xa   : > { %p35_p0 = scmp.ge.s32.totalorder %s33_s17, 2  ;;  %p47_p1 = scmp.ne.s32.totalorder %s1433_s11, %s1429_s10 }
   0xb   : > { %p48_p2 = scmp.eq.s32.totalorder %s1445_s14, 0  ;;  %p53_p3 = scmp.ne.s32.totalorder %s1429_s10, %s1425_s9 }
   0xc   : > { %s2675_s17 = smov (%p35_p0, %s33_s17), 0  ;;  %p54_p5 = scmp.eq.s32.totalorder %s1141_s15, 0 }
   0xd   : > { %p1510_p4 = por %p48_p2, %p47_p1  ;;  %s37_s20 = ssub.s32 %s1441_s13, %s2675_s17 }
   0xe   : > { %p107_p6 = scmp.eq.s32.totalorder %s1141_s15, 1  ;;  %p38_p7 = scmp.eq.s32.totalorder %s37_s20, 0 }
   0xf   : > { %p1516_p8 = por %p54_p5, %p53_p3  ;;  %p113_p10 = scmp.eq.s32.totalorder %s1142_s16, 1 }
  0x10   : > { %p1520_p9 = por %p107_p6, %p47_p1  ;;  %p1181_p13 = scmp.lt.s32.totalorder %s1445_s14, 2 }
  0x11   : > { %s2588_s21 = scalar_select %p1516_p8, 1, 0 }
  0x12   : > { %s2589_s22 = scalar_select %p1520_p9, 1, 0 }
  0x13   : > { %s1525_s23 = scalar_select %p38_p7, %s1433_s11, %s40_s18  }
  0x14   : > { %p1527_p11 = por %p113_p10, %p53_p3  ;;  %s1534_s25 = sand.u32 1, %s1433_s11  }
  0x15   : > { %s1145_s26 = sshll.u32 %s1534_s25, 2  ;;  %s1161_s27 = sshll.u32 %s1441_s13, 6 }
  0x16   : > { %s2590_s24 = scalar_select %p1527_p11, 1, 0 }
  0x17   : > { %s1541_s30 = scalar_lea.hbm %s2547_s0, %s1161_s27  ;;  %s137_s3 = scalar_lea.vmem [#allocation2], %s1145_s26 }
  0x18   : > { %s145_s4 = sshll.u32 %s137_s3, 4  ;;  %p1547_p0 = pnand %p1181_p13, %p1510_p4  ;;  %s1543_s4 = int_to_ptr.vmem [resolvable:$true] %s145_s4 }
  0x19   : > { %s134_s6 = scalar_lea.sflag [#allocation3], %s1534_s25  ;;  %s1299_s7 = scalar_lea.hbm %s1541_s30, 64 }
  0x1a   : > { %p1300_p3 = scmp.ne.s32.totalorder %s1541_s30, %s1299_s7  ;;  %p1301_p5 = pneg %p1547_p0 }
  0x1b   : > { %s1304_s16 = scalar_lea.hbm %s2547_s0, 128  ;;  %p1305_p4 = scmp.lt.u32.totalorder %s1541_s30, %s2547_s0 }
  0x1c   : > { %p1302_p6 = pnand %p1301_p5, %p1300_p3  ;;  %p1306_p10 = scmp.lt.u32.totalorder %s1304_s16, %s1299_s7 }
  0x1d   : > { %p1308_p12 = scmp.lt.u32.totalorder %s1299_s7, %s1541_s30 }
  0x1e   : > { %p1303_p7 = pneg %p1302_p6  ;;  %p1307_p13 = por %p1306_p10, %p1305_p4 }
  0x20   : > { %p1309_p1 = por %p1308_p12, %p1307_p13 }
  0x22   : > { %p1310_p2 = pnand %p1309_p1, %p1303_p7 }
  0x24   : > { %1313 = shalt.err (!%p1310_p2)
}
  0x25   : > { %s1314_s20 = scalar_lea.vmem %s1543_s4, 64  ;;  %s1447_s26 = smov [#allocation2]  }
  0x26   : > { %p1315_p3 = scmp.ne.s32.totalorder %s1543_s4, %s1314_s20  ;;  %s1319_s27 = sshll.u32 %s1447_s26, 4  ;;  %s1320_s27 = int_to_ptr.vmem [resolvable:$false] %s1319_s27 }
  0x27   : > { %s1321_s28 = scalar_lea.vmem %s1320_s27, 128  ;;  %p1322_p9 = scmp.lt.s32.totalorder %s1543_s4, %s1320_s27 }
  0x28   : > { %p1317_p6 = pnand %p1315_p3, %p1301_p5  ;;  %p1323_p4 = scmp.lt.s32.totalorder %s1321_s28, %s1314_s20 }
  0x2a   : > { %p1318_p11 = pneg %p1317_p6  ;;  %p1324_p10 = por %p1323_p4, %p1322_p9 }
  0x2c   : > { %p1325_p12 = pnand %p1324_p10, %p1318_p11 }
  0x2e   : > { %1328 = shalt.err (!%p1325_p12)
}
  0x2f   : > { %1173 = dma.hbm_to_vmem [thread:$0]  (!%p1547_p0), %s1541_s30, 64, %s1543_s4, %s134_s6  }
  0x30   : > { %p2592_p1 = scmp.lt.s32.totalorder %s1445_s14, 3  ;;  %p2593_p2 = scmp.ge.s32.totalorder %s1445_s14, 1 }
  0x31   : > { %s1148_s3 = sshll.u32 %s1534_s25, 9  ;;  %s1162_s7 = sshll.u32 %s1441_s13, 13 }
  0x32   : > { %p1583_p7 = pnand %p2593_p2, %p2592_p1  ;;  %s1592_s16 = scalar_lea.hbm %s2548_s1, %s1162_s7 }
  0x33   : > { %s156_s18 = scalar_lea.vmem [#allocation5], %s1148_s3  ;;  %s153_s30 = scalar_lea.sflag [#allocation6], %s1534_s25 }
  0x34   : > { %s166_s19 = sshll.u32 %s156_s18, 4  ;;  %s1329_s4 = scalar_lea.hbm %s1592_s16, 8192  ;;  %s1594_s19 = int_to_ptr.vmem [resolvable:$true] %s166_s19 }
  0x35   : > { %p1330_p9 = scmp.ne.s32.totalorder %s1592_s16, %s1329_s4  ;;  %s1334_s26 = scalar_lea.hbm %s2548_s1, 16384 }
  0x36   : > { %p1335_p3 = scmp.lt.u32.totalorder %s1592_s16, %s2548_s1  ;;  %p1336_p6 = scmp.lt.u32.totalorder %s1334_s26, %s1329_s4 }
  0x37   : > { %p1332_p11 = pnand %p1330_p9, %p1301_p5  ;;  %p1338_p10 = scmp.lt.u32.totalorder %s1329_s4, %s1592_s16 }
  0x38   : > { %p1337_p4 = por %p1336_p6, %p1335_p3 }
  0x39   : > { %p1333_p13 = pneg %p1332_p11 }
  0x3a   : > { %p1339_p12 = por %p1338_p10, %p1337_p4 }
  0x3c   : > { %p1340_p1 = pnand %p1339_p12, %p1333_p13 }
  0x3e   : > { %1343 = shalt.err (!%p1340_p1)
}
  0x3f   : > { %s1344_s3 = scalar_lea.vmem %s1594_s19, 8192  ;;  %s1448_s7 = smov [#allocation5]  }
  0x40   : > { %p1345_p2 = scmp.ne.s32.totalorder %s1594_s19, %s1344_s3  ;;  %s1349_s8 = sshll.u32 %s1448_s7, 4  ;;  %s1350_s8 = int_to_ptr.vmem [resolvable:$false] %s1349_s8 }
  0x41   : > { %s1351_s15 = scalar_lea.vmem %s1350_s8, 16384  ;;  %p1352_p8 = scmp.lt.s32.totalorder %s1594_s19, %s1350_s8 }
  0x42   : > { %p1347_p9 = pnand %p1345_p2, %p1301_p5  ;;  %p1353_p3 = scmp.lt.s32.totalorder %s1351_s15, %s1344_s3 }
  0x44   : > { %p1348_p11 = pneg %p1347_p9  ;;  %p1354_p6 = por %p1353_p3, %p1352_p8 }
  0x46   : > { %p1355_p4 = pnand %p1354_p6, %p1348_p11 }
  0x48   : > { %1358 = shalt.err (!%p1355_p4)
}
  0x49   : > { %s1449_s18 = smov 256   ;;  %s1450_s4 = smov 16  }
  0x4a   : > { %1176 = dma.hbm_to_vmem [thread:$0]  (!%p1547_p0), %s1592_s16, 8192, %s1594_s19, %s153_s30, %s1449_s18, %s1449_s18, %s1450_s4  }
  0x4b   : > { %178 = sbr.rel (%p1583_p7) target bundleno = 493 (0x1ed), region = 28 }
  0x52   : > { %s1625_s6 = sand.u32 1, %s1429_s10   ;;  %p2595_p8 = scmp.ne.s32.totalorder %s2588_s21, 0 }
  0x53   : > { %s1152_s20 = sshll.u32 %s1625_s6, 2  ;;  %s181_s26 = scalar_lea.sflag [#allocation3], %s1625_s6 }
  0x54   : > { %s1629_s27 = scalar_lea.vmem [#allocation2], %s1152_s20 }
  0x55   : > { %1412 = dma.done.wait (%p2595_p8), %s181_s26, 64  }
  0x56   : > { %1414 = vsyncadd (%p2595_p8), %s181_s26, 4294967232  ;;  %s1153_s25 = sshll.u32 %s1625_s6, 9  ;;  %s190_s5 = scalar_lea.sflag [#allocation6], %s1625_s6 }
  0x57   : > { %s1639_s29 = scalar_lea.vmem [#allocation5], %s1153_s25 }
  0x58   : > { %1416 = dma.done.wait (%p2595_p8), %s190_s5, 8192  }
  0x59   : > { %1418 = vsyncadd (%p2595_p8), %s190_s5, 4294959104  ;;  %v1646_v0 = vld [vmem:[%s1639_s29] sm:$0xff]  ;;  %v1649_v1 = vld [vmem:[%s1639_s29 + $0x8] sm:$0xff]  ;;  %s2243_s21 = scalar_lea.vmem [#allocation7], %s1153_s25  ;;  %s1163_s16 = sshll.u32 %s1437_s12, 13 }
  0x5a   : > { %v1652_v2 = vld [vmem:[%s1639_s29 + $0x20] sm:$0xff]  ;;  %v285_v3 = vadd.f32 %v1649_v1, %v1646_v0  ;;  %v1657_v4 = vld [vmem:[%s1639_s29 + $0x28] sm:$0xff]  ;;  %v1660_v5 = vld [vmem:[%s1639_s29 + $0x10] sm:$0xff]  ;;  %s1031_s19 = sshll.u32 %s2243_s21, 4  ;;  %s2490_s28 = scalar_lea.hbm %s2549_s2, %s1163_s16  ;;  %s2492_s19 = int_to_ptr.vmem [resolvable:$true] %s1031_s19 }
  0x5b   : > { %v1663_v6 = vld [vmem:[%s1639_s29 + $0x18] sm:$0xff]  ;;  %v291_v7 = vadd.f32 %v1657_v4, %v1652_v2  ;;  %v1668_v8 = vld [vmem:[%s1639_s29 + $0x30] sm:$0xff]  ;;  %v1678_v12 = vld [vmem:[%s1639_s29 + $0x40] sm:$0xff]  ;;  %s1015_s3 = scalar_lea.sflag [#allocation4], %s1625_s6  ;;  %s1359_s7 = scalar_lea.vmem %s2492_s19, 8192 }
  0x5c   : > { %v1671_v9 = vld [vmem:[%s1639_s29 + $0x38] sm:$0xff]  ;;  %286 = vadd.xlane.f32.xlu0 %v285_v3  ;;  %v288_v10 = vadd.f32 %v1663_v6, %v1660_v5  ;;  %v1681_v13 = vld [vmem:[%s1639_s29 + $0x48] sm:$0xff]  ;;  %v1684_v14 = vld [vmem:[%s1639_s29 + $0x50] sm:$0xff]  ;;  %p1360_p0 = scmp.ne.s32.totalorder %s2492_s19, %s1359_s7  ;;  %p2666_p5 = scmp.ne.s32.totalorder %s2589_s22, 0 }
  0x5d   : > { %292 = vadd.xlane.f32.xlu1 %v291_v7  ;;  %v294_v11 = vadd.f32 %v1671_v9, %v1668_v8  ;;  %v1687_v15 = vld [vmem:[%s1639_s29 + $0x58] sm:$0xff]  ;;  %v297_v16 = vadd.f32 %v1681_v13, %v1678_v12  ;;  %v1694_v18 = vld [vmem:[%s1639_s29 + $0x60] sm:$0xff]  ;;  %v1697_v19 = vld [vmem:[%s1639_s29 + $0x68] sm:$0xff]  ;;  %s1451_s8 = smov [#allocation7]  }
  0x5e   : > { %v300_v17 = vadd.f32 %v1687_v15, %v1684_v14  ;;  %v1700_v20 = vld [vmem:[%s1639_s29 + $0x70] sm:$0xff]  ;;  %v1703_v21 = vld [vmem:[%s1639_s29 + $0x78] sm:$0xff]  ;;  %v303_v22 = vadd.f32 %v1697_v19, %v1694_v18  ;;  %v1710_v24 = vld [vmem:[%s1639_s29 + $0x80] sm:$0xff]  ;;  %p1361_p7 = pnand %p1360_p0, %p2666_p5  ;;  %s1363_s15 = sshll.u32 %s1451_s8, 4  ;;  %s1364_s15 = int_to_ptr.vmem [resolvable:$false] %s1363_s15 }
  0x5f   : > { %v306_v23 = vadd.f32 %v1703_v21, %v1700_v20  ;;  %v1713_v25 = vld [vmem:[%s1639_s29 + $0x88] sm:$0xff]  ;;  %v1716_v26 = vld [vmem:[%s1639_s29 + $0x90] sm:$0xff]  ;;  %v1719_v27 = vld [vmem:[%s1639_s29 + $0x98] sm:$0xff]  ;;  %s1365_s18 = scalar_lea.vmem %s1364_s15, 16384  ;;  %p1366_p10 = scmp.lt.s32.totalorder %s2492_s19, %s1364_s15 }
  0x60   : > { %289 = vadd.xlane.f32.xlu0 %v288_v10  ;;  %v309_v28 = vadd.f32 %v1713_v25, %v1710_v24  ;;  %v312_v29 = vadd.f32 %v1719_v27, %v1716_v26  ;;  %v1726_v30 = vld [vmem:[%s1639_s29 + $0xa0] sm:$0xff]  ;;  %v1729_v31 = vld [vmem:[%s1639_s29 + $0xa8] sm:$0xff]  ;;  %v1732_v32 = vld [vmem:[%s1639_s29 + $0xb0] sm:$0xff]  ;;  %p1362_p13 = pneg %p1361_p7  ;;  %p1367_p12 = scmp.lt.s32.totalorder %s1365_s18, %s1359_s7 }
  0x61   : > { %295 = vadd.xlane.f32.xlu1 %v294_v11  ;;  %v1735_v33 = vld [vmem:[%s1639_s29 + $0xb8] sm:$0xff]  ;;  %v315_v34 = vadd.f32 %v1729_v31, %v1726_v30  ;;  %v1742_v36 = vld [vmem:[%s1639_s29 + $0xc0] sm:$0xff]  ;;  %v1745_v37 = vld [vmem:[%s1639_s29 + $0xc8] sm:$0xff] }
  0x62   : > { %v318_v35 = vadd.f32 %v1735_v33, %v1732_v32  ;;  %v1748_v38 = vld [vmem:[%s1639_s29 + $0xd0] sm:$0xff]  ;;  %v1751_v39 = vld [vmem:[%s1639_s29 + $0xd8] sm:$0xff]  ;;  %v321_v40 = vadd.f32 %v1745_v37, %v1742_v36  ;;  %v1758_v42 = vld [vmem:[%s1639_s29 + $0xe0] sm:$0xff]  ;;  %p1368_p1 = por %p1367_p12, %p1366_p10 }
  0x63   : > { %v324_v41 = vadd.f32 %v1751_v39, %v1748_v38  ;;  %v1761_v43 = vld [vmem:[%s1639_s29 + $0xe8] sm:$0xff]  ;;  %v1764_v44 = vld [vmem:[%s1639_s29 + $0xf0] sm:$0xff]  ;;  %v1767_v45 = vld [vmem:[%s1639_s29 + $0xf8] sm:$0xff] }
  0x64   : > { %298 = vadd.xlane.f32.xlu0 %v297_v16  ;;  %v327_v46 = vadd.f32 %v1761_v43, %v1758_v42  ;;  %v330_v47 = vadd.f32 %v1767_v45, %v1764_v44  ;;  %v1774_v48 = vld [vmem:[%s1639_s29 + $0x100] sm:$0xff]  ;;  %v1777_v49 = vld [vmem:[%s1639_s29 + $0x108] sm:$0xff]  ;;  %v1780_v50 = vld [vmem:[%s1639_s29 + $0x110] sm:$0xff]  ;;  %p1369_p2 = pnand %p1368_p1, %p1362_p13 }
  0x65   : > { %301 = vadd.xlane.f32.xlu1 %v300_v17  ;;  %v1783_v51 = vld [vmem:[%s1639_s29 + $0x118] sm:$0xff]  ;;  %v333_v52 = vadd.f32 %v1777_v49, %v1774_v48  ;;  %v1790_v54 = vld [vmem:[%s1639_s29 + $0x120] sm:$0xff]  ;;  %v1793_v55 = vld [vmem:[%s1639_s29 + $0x128] sm:$0xff] }
  0x66   : > { %v336_v53 = vadd.f32 %v1783_v51, %v1780_v50  ;;  %v1796_v56 = vld [vmem:[%s1639_s29 + $0x130] sm:$0xff]  ;;  %v1799_v57 = vld [vmem:[%s1639_s29 + $0x138] sm:$0xff]  ;;  %v339_v58 = vadd.f32 %v1793_v55, %v1790_v54  ;;  %v1806_v60 = vld [vmem:[%s1639_s29 + $0x140] sm:$0xff] }
  0x67   : > { %v342_v59 = vadd.f32 %v1799_v57, %v1796_v56  ;;  %v1809_v61 = vld [vmem:[%s1639_s29 + $0x148] sm:$0xff]  ;;  %v1812_v62 = vld [vmem:[%s1639_s29 + $0x150] sm:$0xff]  ;;  %v1815_v63 = vld [vmem:[%s1639_s29 + $0x158] sm:$0xff] }
  0x68   : > { %304 = vadd.xlane.f32.xlu0 %v303_v22  ;;  %v345_v3 = vadd.f32 %v1809_v61, %v1806_v60  ;;  %v348_v7 = vadd.f32 %v1815_v63, %v1812_v62  ;;  %v1822_v10 = vld [vmem:[%s1639_s29 + $0x160] sm:$0xff]  ;;  %v1825_v11 = vld [vmem:[%s1639_s29 + $0x168] sm:$0xff]  ;;  %v1828_v16 = vld [vmem:[%s1639_s29 + $0x170] sm:$0xff] }
  0x69   : > { %307 = vadd.xlane.f32.xlu1 %v306_v23  ;;  %v1831_v17 = vld [vmem:[%s1639_s29 + $0x178] sm:$0xff]  ;;  %v351_v22 = vadd.f32 %v1825_v11, %v1822_v10 }
  0x6a   : > { %v354_v23 = vadd.f32 %v1831_v17, %v1828_v16 }
  0x6c   : > { %310 = vadd.xlane.f32.xlu0 %v309_v28  ;;  %v1838_v28 = vld [vmem:[%s1639_s29 + $0x180] sm:$0xff] }
  0x6d   : > { %313 = vadd.xlane.f32.xlu1 %v312_v29  ;;  %v1841_v29 = vld [vmem:[%s1639_s29 + $0x188] sm:$0xff] }
  0x70   : > { %316 = vadd.xlane.f32.xlu0 %v315_v34  ;;  %v1844_v34 = vld [vmem:[%s1639_s29 + $0x190] sm:$0xff] }
  0x71   : > { %319 = vadd.xlane.f32.xlu1 %v318_v35  ;;  %2596 = vst [vmem:[#allocation11_spill] sm:$0xff] %v1844_v34  ;;  %v1847_v35 = vld [vmem:[%s1639_s29 + $0x198] sm:$0xff] }
  0x72   : > { %2597 = vst [vmem:[#allocation12_spill] sm:$0xff] %v1847_v35 }
  0x74   : > { %322 = vadd.xlane.f32.xlu0 %v321_v40  ;;  %v357_v40 = vadd.f32 %v1841_v29, %v1838_v28 }
  0x75   : > { %325 = vadd.xlane.f32.xlu1 %v324_v41  ;;  %v360_v41 = vadd.f32 %v1847_v35, %v1844_v34 }
  0x78   : > { %328 = vadd.xlane.f32.xlu0 %v327_v46  ;;  %v1854_v46 = vld [vmem:[%s1639_s29 + $0x1a0] sm:$0xff] }
  0x79   : > { %331 = vadd.xlane.f32.xlu1 %v330_v47  ;;  %2598 = vst [vmem:[#allocation13_spill] sm:$0xff] %v1854_v46  ;;  %v1857_v47 = vld [vmem:[%s1639_s29 + $0x1a8] sm:$0xff] }
  0x7a   : > { %2599 = vst [vmem:[#allocation14_spill] sm:$0xff] %v1857_v47 }
  0x7c   : > { %334 = vadd.xlane.f32.xlu0 %v333_v52  ;;  %v1860_v52 = vld [vmem:[%s1639_s29 + $0x1b0] sm:$0xff] }
  0x7d   : > { %337 = vadd.xlane.f32.xlu1 %v336_v53  ;;  %2600 = vst [vmem:[#allocation15_spill] sm:$0xff] %v1860_v52  ;;  %v1863_v53 = vld [vmem:[%s1639_s29 + $0x1b8] sm:$0xff] }
  0x7e   : > { %2601 = vst [vmem:[#allocation16_spill] sm:$0xff] %v1863_v53 }
  0x80   : > { %340 = vadd.xlane.f32.xlu0 %v339_v58  ;;  %v363_v58 = vadd.f32 %v1857_v47, %v1854_v46  ;;  %v1889_v47 = vld [vmem:[%s1639_s29 + $0x1e8] sm:$0xff] }
  0x81   : > { %343 = vadd.xlane.f32.xlu1 %v342_v59  ;;  %v366_v59 = vadd.f32 %v1863_v53, %v1860_v52  ;;  %2606 = vst [vmem:[#allocation21_spill] sm:$0xff] %v1889_v47  ;;  %v1892_v53 = vld [vmem:[%s1639_s29 + $0x1f0] sm:$0xff]  ;;  %v1895_v52 = vld [vmem:[%s1639_s29 + $0x1f8] sm:$0xff] }
  0x82   : > { %2607 = vst [vmem:[#allocation22_spill] sm:$0xff] %v1895_v52 }
  0x84   : > { %346 = vadd.xlane.f32.xlu0 %v345_v3  ;;  %v1870_v3 = vld [vmem:[%s1639_s29 + $0x1c0] sm:$0xff] }
  0x85   : > { %349 = vadd.xlane.f32.xlu1 %v348_v7  ;;  %2602 = vst [vmem:[#allocation17_spill] sm:$0xff] %v1870_v3  ;;  %v1873_v7 = vld [vmem:[%s1639_s29 + $0x1c8] sm:$0xff] }
  0x86   : > { %2603 = vst [vmem:[#allocation18_spill] sm:$0xff] %v1873_v7  ;;  %v369_v35 = vadd.f32 %v1873_v7, %v1870_v3 }
  0x88   : > { %352 = vadd.xlane.f32.xlu0 %v351_v22  ;;  %v1876_v22 = vld [vmem:[%s1639_s29 + $0x1d0] sm:$0xff] }
  0x89   : > { %355 = vadd.xlane.f32.xlu1 %v354_v23  ;;  %2604 = vst [vmem:[#allocation19_spill] sm:$0xff] %v1876_v22  ;;  %v1879_v23 = vld [vmem:[%s1639_s29 + $0x1d8] sm:$0xff] }
  0x8a   : > { %2605 = vst [vmem:[#allocation20_spill] sm:$0xff] %v1879_v23 }
  0x8c   : > { %358 = vadd.xlane.f32.xlu0 %v357_v40  ;;  %v372_v40 = vadd.f32 %v1879_v23, %v1876_v22 }
  0x8d   : > { %361 = vadd.xlane.f32.xlu1 %v360_v41  ;;  %v1886_v41 = vld [vmem:[%s1639_s29 + $0x1e0] sm:$0xff] }
  0x8e   : > { %v375_v46 = vadd.f32 %v1889_v47, %v1886_v41 }
  0x90   : > { %364 = vadd.xlane.f32.xlu0 %v363_v58  ;;  %v378_v58 = vadd.f32 %v1895_v52, %v1892_v53 }
  0x91   : > { %367 = vadd.xlane.f32.xlu1 %v366_v59 }
  0x94   : > { %370 = vadd.xlane.f32.xlu0 %v369_v35 }
  0x95   : > { %373 = vadd.xlane.f32.xlu1 %v372_v40 }
  0x98   : > { %376 = vadd.xlane.f32.xlu0 %v375_v46 }
  0x99   : > { %379 = vadd.xlane.f32.xlu1 %v378_v58 }
  0xe9   : > { %v287_v59 = vpop.xlane.xlu0 %286 }
  0xea   : > { %v381_v23 = vmul.f32 0.00390625, %v287_v59  ;;  %v293_v22 = vpop.xlane.xlu1 %292 }
  0xeb   : > { %v383_v7 = vmul.f32 0.00390625, %v293_v22 }
  0xec   : > { %v1902_v3 = vsub.f32 %v1646_v0, %v381_v23  ;;  %v1905_v34 = vsub.f32 %v1649_v1, %v381_v23 }
  0xed   : > { %v1908_v35 = vsub.f32 %v1652_v2, %v383_v7  ;;  %v1911_v40 = vsub.f32 %v1657_v4, %v383_v7  ;;  %v290_v47 = vpop.xlane.xlu0 %289 }
  0xee   : > { %2608 = vst [vmem:[#allocation23_spill] sm:$0xff] %v1902_v3  ;;  %2609 = vst [vmem:[#allocation24_spill] sm:$0xff] %v1905_v34  ;;  %v382_v52 = vmul.f32 0.00390625, %v290_v47  ;;  %v296_v46 = vpop.xlane.xlu1 %295  ;;  %v477_v58 = vmul.f32 %v1902_v3, %v1902_v3  ;;  %v478_v22 = vmul.f32 %v1905_v34, %v1905_v34 }
  0xef   : > { %2610 = vst [vmem:[#allocation25_spill] sm:$0xff] %v1908_v35  ;;  %2611 = vst [vmem:[#allocation26_spill] sm:$0xff] %v1911_v40  ;;  %v384_v0 = vmul.f32 0.00390625, %v296_v46  ;;  %v481_v1 = vmul.f32 %v1908_v35, %v1908_v35  ;;  %v482_v2 = vmul.f32 %v1911_v40, %v1911_v40 }
  0xf0   : > { %v1922_v23 = vsub.f32 %v1660_v5, %v382_v52  ;;  %v1925_v4 = vsub.f32 %v1663_v6, %v382_v52  ;;  %v541_v47 = vadd.f32 %v478_v22, %v477_v58 }
  0xf1   : > { %v1928_v7 = vsub.f32 %v1668_v8, %v384_v0  ;;  %v1931_v59 = vsub.f32 %v1671_v9, %v384_v0  ;;  %v299_v46 = vpop.xlane.xlu0 %298  ;;  %v547_v3 = vadd.f32 %v482_v2, %v481_v1 }
  0xf2   : > { %v385_v34 = vmul.f32 0.00390625, %v299_v46  ;;  %542 = vadd.xlane.f32.xlu0 %v541_v47  ;;  %v302_v35 = vpop.xlane.xlu1 %301  ;;  %v479_v40 = vmul.f32 %v1922_v23, %v1922_v23  ;;  %v480_v5 = vmul.f32 %v1925_v4, %v1925_v4 }
  0xf3   : > { %v386_v6 = vmul.f32 0.00390625, %v302_v35  ;;  %v483_v52 = vmul.f32 %v1928_v7, %v1928_v7  ;;  %v484_v8 = vmul.f32 %v1931_v59, %v1931_v59 }
  0xf4   : > { %v1942_v9 = vsub.f32 %v1678_v12, %v385_v34  ;;  %v1945_v58 = vsub.f32 %v1681_v13, %v385_v34  ;;  %v544_v22 = vadd.f32 %v480_v5, %v479_v40 }
  0xf5   : > { %v1948_v0 = vsub.f32 %v1684_v14, %v386_v6  ;;  %v1951_v1 = vsub.f32 %v1687_v15, %v386_v6  ;;  %v305_v35 = vpop.xlane.xlu0 %304  ;;  %v550_v46 = vadd.f32 %v484_v8, %v483_v52 }
  0xf6   : > { %v387_v2 = vmul.f32 0.00390625, %v305_v35  ;;  %548 = vadd.xlane.f32.xlu0 %v547_v3  ;;  %545 = vadd.xlane.f32.xlu1 %v544_v22  ;;  %v308_v47 = vpop.xlane.xlu1 %307  ;;  %v485_v12 = vmul.f32 %v1942_v9, %v1942_v9  ;;  %v486_v13 = vmul.f32 %v1945_v58, %v1945_v58 }
  0xf7   : > { %v388_v34 = vmul.f32 0.00390625, %v308_v47  ;;  %v487_v14 = vmul.f32 %v1948_v0, %v1948_v0  ;;  %v488_v15 = vmul.f32 %v1951_v1, %v1951_v1 }
  0xf8   : > { %v1962_v40 = vsub.f32 %v1694_v18, %v387_v2  ;;  %v1965_v3 = vsub.f32 %v1697_v19, %v387_v2  ;;  %v553_v5 = vadd.f32 %v486_v13, %v485_v12 }
  0xf9   : > { %v1968_v6 = vsub.f32 %v1700_v20, %v388_v34  ;;  %v1971_v52 = vsub.f32 %v1703_v21, %v388_v34  ;;  %v311_v8 = vpop.xlane.xlu0 %310  ;;  %v556_v47 = vadd.f32 %v488_v15, %v487_v14 }
  0xfa   : > { %v389_v22 = vmul.f32 0.00390625, %v311_v8  ;;  %551 = vadd.xlane.f32.xlu1 %v550_v46  ;;  %554 = vadd.xlane.f32.xlu0 %v553_v5  ;;  %v314_v35 = vpop.xlane.xlu1 %313  ;;  %v489_v18 = vmul.f32 %v1962_v40, %v1962_v40  ;;  %v490_v19 = vmul.f32 %v1965_v3, %v1965_v3 }
  0xfb   : > { %v390_v2 = vmul.f32 0.00390625, %v314_v35  ;;  %v491_v20 = vmul.f32 %v1968_v6, %v1968_v6  ;;  %v492_v21 = vmul.f32 %v1971_v52, %v1971_v52 }
  0xfc   : > { %v1982_v12 = vsub.f32 %v1710_v24, %v389_v22  ;;  %v1985_v46 = vsub.f32 %v1713_v25, %v389_v22  ;;  %v559_v13 = vadd.f32 %v490_v19, %v489_v18 }
  0xfd   : > { %v1988_v34 = vsub.f32 %v1716_v26, %v390_v2  ;;  %v1991_v14 = vsub.f32 %v1719_v27, %v390_v2  ;;  %v317_v15 = vpop.xlane.xlu0 %316  ;;  %v562_v35 = vadd.f32 %v492_v21, %v491_v20 }
  0xfe   : > { %v391_v5 = vmul.f32 0.00390625, %v317_v15  ;;  %557 = vadd.xlane.f32.xlu1 %v556_v47  ;;  %560 = vadd.xlane.f32.xlu0 %v559_v13  ;;  %v320_v8 = vpop.xlane.xlu1 %319  ;;  %v493_v24 = vmul.f32 %v1982_v12, %v1982_v12  ;;  %v494_v25 = vmul.f32 %v1985_v46, %v1985_v46 }
  0xff   : > { %v392_v22 = vmul.f32 0.00390625, %v320_v8  ;;  %v495_v26 = vmul.f32 %v1988_v34, %v1988_v34  ;;  %v496_v27 = vmul.f32 %v1991_v14, %v1991_v14 }
 0x100   : > { %v2002_v18 = vsub.f32 %v1726_v30, %v391_v5  ;;  %v2005_v47 = vsub.f32 %v1729_v31, %v391_v5  ;;  %v565_v19 = vadd.f32 %v494_v25, %v493_v24 }
 0x101   : > { %v2008_v2 = vsub.f32 %v1732_v32, %v392_v22  ;;  %v2011_v20 = vsub.f32 %v1735_v33, %v392_v22  ;;  %v323_v21 = vpop.xlane.xlu0 %322  ;;  %v568_v8 = vadd.f32 %v496_v27, %v495_v26 }
 0x102   : > { %v393_v13 = vmul.f32 0.00390625, %v323_v21  ;;  %563 = vadd.xlane.f32.xlu1 %v562_v35  ;;  %566 = vadd.xlane.f32.xlu0 %v565_v19  ;;  %v326_v15 = vpop.xlane.xlu1 %325  ;;  %v497_v30 = vmul.f32 %v2002_v18, %v2002_v18  ;;  %v498_v31 = vmul.f32 %v2005_v47, %v2005_v47 }
 0x103   : > { %v394_v5 = vmul.f32 0.00390625, %v326_v15  ;;  %v499_v32 = vmul.f32 %v2008_v2, %v2008_v2  ;;  %v500_v33 = vmul.f32 %v2011_v20, %v2011_v20 }
 0x104   : > { %v2022_v24 = vsub.f32 %v1742_v36, %v393_v13  ;;  %v2025_v35 = vsub.f32 %v1745_v37, %v393_v13  ;;  %v571_v25 = vadd.f32 %v498_v31, %v497_v30 }
 0x105   : > { %v2028_v22 = vsub.f32 %v1748_v38, %v394_v5  ;;  %v2031_v26 = vsub.f32 %v1751_v39, %v394_v5  ;;  %v329_v27 = vpop.xlane.xlu0 %328  ;;  %v574_v15 = vadd.f32 %v500_v33, %v499_v32 }
 0x106   : > { %v395_v19 = vmul.f32 0.00390625, %v329_v27  ;;  %569 = vadd.xlane.f32.xlu1 %v568_v8  ;;  %572 = vadd.xlane.f32.xlu0 %v571_v25  ;;  %v332_v21 = vpop.xlane.xlu1 %331  ;;  %v501_v36 = vmul.f32 %v2022_v24, %v2022_v24  ;;  %v502_v37 = vmul.f32 %v2025_v35, %v2025_v35 }
 0x107   : > { %v396_v13 = vmul.f32 0.00390625, %v332_v21  ;;  %v503_v38 = vmul.f32 %v2028_v22, %v2028_v22  ;;  %v504_v39 = vmul.f32 %v2031_v26, %v2031_v26 }
 0x108   : > { %v2042_v30 = vsub.f32 %v1758_v42, %v395_v19  ;;  %v2045_v8 = vsub.f32 %v1761_v43, %v395_v19  ;;  %v577_v31 = vadd.f32 %v502_v37, %v501_v36 }
 0x109   : > { %v2048_v5 = vsub.f32 %v1764_v44, %v396_v13  ;;  %v2051_v32 = vsub.f32 %v1767_v45, %v396_v13  ;;  %v335_v33 = vpop.xlane.xlu0 %334  ;;  %v580_v21 = vadd.f32 %v504_v39, %v503_v38 }
 0x10a   : > { %v397_v25 = vmul.f32 0.00390625, %v335_v33  ;;  %575 = vadd.xlane.f32.xlu1 %v574_v15  ;;  %578 = vadd.xlane.f32.xlu0 %v577_v31  ;;  %v338_v27 = vpop.xlane.xlu1 %337  ;;  %v505_v42 = vmul.f32 %v2042_v30, %v2042_v30  ;;  %v506_v43 = vmul.f32 %v2045_v8, %v2045_v8 }
 0x10b   : > { %v398_v19 = vmul.f32 0.00390625, %v338_v27  ;;  %v507_v44 = vmul.f32 %v2048_v5, %v2048_v5  ;;  %v508_v45 = vmul.f32 %v2051_v32, %v2051_v32 }
 0x10c   : > { %v2062_v36 = vsub.f32 %v1774_v48, %v397_v25  ;;  %v2065_v15 = vsub.f32 %v1777_v49, %v397_v25  ;;  %v583_v37 = vadd.f32 %v506_v43, %v505_v42 }
 0x10d   : > { %v2068_v13 = vsub.f32 %v1780_v50, %v398_v19  ;;  %v2071_v38 = vsub.f32 %v1783_v51, %v398_v19  ;;  %v341_v39 = vpop.xlane.xlu0 %340  ;;  %v586_v27 = vadd.f32 %v508_v45, %v507_v44 }
 0x10e   : > { %v399_v31 = vmul.f32 0.00390625, %v341_v39  ;;  %581 = vadd.xlane.f32.xlu1 %v580_v21  ;;  %584 = vadd.xlane.f32.xlu0 %v583_v37  ;;  %v344_v33 = vpop.xlane.xlu1 %343  ;;  %v509_v48 = vmul.f32 %v2062_v36, %v2062_v36  ;;  %v510_v49 = vmul.f32 %v2065_v15, %v2065_v15 }
 0x10f   : > { %v400_v25 = vmul.f32 0.00390625, %v344_v33  ;;  %v511_v50 = vmul.f32 %v2068_v13, %v2068_v13  ;;  %v512_v51 = vmul.f32 %v2071_v38, %v2071_v38 }
 0x110   : > { %v2082_v42 = vsub.f32 %v1790_v54, %v399_v31  ;;  %v2085_v21 = vsub.f32 %v1793_v55, %v399_v31  ;;  %v589_v43 = vadd.f32 %v510_v49, %v509_v48 }
 0x111   : > { %v2088_v19 = vsub.f32 %v1796_v56, %v400_v25  ;;  %v2091_v44 = vsub.f32 %v1799_v57, %v400_v25  ;;  %v347_v45 = vpop.xlane.xlu0 %346  ;;  %v592_v33 = vadd.f32 %v512_v51, %v511_v50 }
 0x112   : > { %v401_v37 = vmul.f32 0.00390625, %v347_v45  ;;  %587 = vadd.xlane.f32.xlu1 %v586_v27  ;;  %590 = vadd.xlane.f32.xlu0 %v589_v43  ;;  %v350_v39 = vpop.xlane.xlu1 %349  ;;  %v513_v54 = vmul.f32 %v2082_v42, %v2082_v42  ;;  %v514_v55 = vmul.f32 %v2085_v21, %v2085_v21 }
 0x113   : > { %v402_v31 = vmul.f32 0.00390625, %v350_v39  ;;  %v515_v56 = vmul.f32 %v2088_v19, %v2088_v19  ;;  %v516_v57 = vmul.f32 %v2091_v44, %v2091_v44 }
 0x114   : > { %v2102_v48 = vsub.f32 %v1806_v60, %v401_v37  ;;  %v2105_v27 = vsub.f32 %v1809_v61, %v401_v37  ;;  %v595_v49 = vadd.f32 %v514_v55, %v513_v54 }
 0x115   : > { %v2108_v25 = vsub.f32 %v1812_v62, %v402_v31  ;;  %v2111_v50 = vsub.f32 %v1815_v63, %v402_v31  ;;  %v353_v51 = vpop.xlane.xlu0 %352  ;;  %v598_v39 = vadd.f32 %v516_v57, %v515_v56 }
 0x116   : > { %v403_v43 = vmul.f32 0.00390625, %v353_v51  ;;  %593 = vadd.xlane.f32.xlu1 %v592_v33  ;;  %596 = vadd.xlane.f32.xlu0 %v595_v49  ;;  %v356_v45 = vpop.xlane.xlu1 %355  ;;  %v517_v60 = vmul.f32 %v2102_v48, %v2102_v48  ;;  %v518_v61 = vmul.f32 %v2105_v27, %v2105_v27 }
 0x117   : > { %v404_v37 = vmul.f32 0.00390625, %v356_v45  ;;  %v519_v62 = vmul.f32 %v2108_v25, %v2108_v25  ;;  %v520_v63 = vmul.f32 %v2111_v50, %v2111_v50 }
 0x118   : > { %v2122_v54 = vsub.f32 %v1822_v10, %v403_v43  ;;  %v2125_v33 = vsub.f32 %v1825_v11, %v403_v43  ;;  %v601_v55 = vadd.f32 %v518_v61, %v517_v60 }
 0x119   : > { %v2128_v31 = vsub.f32 %v1828_v16, %v404_v37  ;;  %v2131_v56 = vsub.f32 %v1831_v17, %v404_v37  ;;  %v359_v57 = vpop.xlane.xlu0 %358  ;;  %v604_v45 = vadd.f32 %v520_v63, %v519_v62  ;;  %v2617_v37 = vld [vmem:[#allocation11_spill] sm:$0xff]  ;;  %v2619_v63 = vld [vmem:[#allocation12_spill] sm:$0xff] }
 0x11a   : > { %2612 = vst [vmem:[#allocation27_spill] sm:$0xff] %v2125_v33  ;;  %v405_v49 = vmul.f32 0.00390625, %v359_v57  ;;  %599 = vadd.xlane.f32.xlu1 %v598_v39  ;;  %602 = vadd.xlane.f32.xlu0 %v601_v55  ;;  %v362_v51 = vpop.xlane.xlu1 %361  ;;  %v521_v10 = vmul.f32 %v2122_v54, %v2122_v54  ;;  %v522_v11 = vmul.f32 %v2125_v33, %v2125_v33 }
 0x11b   : > { %2613 = vst [vmem:[#allocation28_spill] sm:$0xff] %v2128_v31  ;;  %2614 = vst [vmem:[#allocation29_spill] sm:$0xff] %v2131_v56  ;;  %v406_v43 = vmul.f32 0.00390625, %v362_v51  ;;  %v523_v16 = vmul.f32 %v2128_v31, %v2128_v31  ;;  %v524_v17 = vmul.f32 %v2131_v56, %v2131_v56 }
 0x11c   : > { %v2142_v60 = vsub.f32 %v1838_v28, %v405_v49  ;;  %v2145_v39 = vsub.f32 %v1841_v29, %v405_v49  ;;  %v607_v61 = vadd.f32 %v522_v11, %v521_v10 }
 0x11d   : > { %v2148_v62 = vsub.f32 %v2617_v37, %v406_v43  ;;  %v2151_v55 = vsub.f32 %v2619_v63, %v406_v43  ;;  %v365_v57 = vpop.xlane.xlu0 %364  ;;  %v610_v33 = vadd.f32 %v524_v17, %v523_v16  ;;  %v2621_v43 = vld [vmem:[#allocation13_spill] sm:$0xff]  ;;  %v2625_v17 = vld [vmem:[#allocation15_spill] sm:$0xff] }
 0x11e   : > { %2615 = vst [vmem:[#allocation30_spill] sm:$0xff] %v2142_v60  ;;  %2616 = vst [vmem:[#allocation31_spill] sm:$0xff] %v2145_v39  ;;  %v407_v51 = vmul.f32 0.00390625, %v365_v57  ;;  %605 = vadd.xlane.f32.xlu1 %v604_v45  ;;  %608 = vadd.xlane.f32.xlu0 %v607_v61  ;;  %v368_v31 = vpop.xlane.xlu1 %367  ;;  %v525_v28 = vmul.f32 %v2142_v60, %v2142_v60  ;;  %v526_v29 = vmul.f32 %v2145_v39, %v2145_v39  ;;  %v2623_v45 = vld [vmem:[#allocation14_spill] sm:$0xff]  ;;  %v2627_v57 = vld [vmem:[#allocation16_spill] sm:$0xff] }
 0x11f   : > { %2618 = vst [vmem:[#allocation11_spill] sm:$0xff] %v2148_v62  ;;  %2620 = vst [vmem:[#allocation12_spill] sm:$0xff] %v2151_v55  ;;  %v408_v49 = vmul.f32 0.00390625, %v368_v31  ;;  %v527_v10 = vmul.f32 %v2148_v62, %v2148_v62  ;;  %v528_v11 = vmul.f32 %v2151_v55, %v2151_v55 }
 0x120   : > { %v2162_v37 = vsub.f32 %v2621_v43, %v407_v51  ;;  %v2165_v61 = vsub.f32 %v2623_v45, %v407_v51  ;;  %v613_v16 = vadd.f32 %v526_v29, %v525_v28 }
 0x121   : > { %v2168_v63 = vsub.f32 %v2625_v17, %v408_v49  ;;  %v2171_v60 = vsub.f32 %v2627_v57, %v408_v49  ;;  %v371_v31 = vpop.xlane.xlu0 %370  ;;  %v616_v56 = vadd.f32 %v528_v11, %v527_v10  ;;  %v2629_v49 = vld [vmem:[#allocation17_spill] sm:$0xff]  ;;  %v2633_v11 = vld [vmem:[#allocation19_spill] sm:$0xff] }
 0x122   : > { %2622 = vst [vmem:[#allocation13_spill] sm:$0xff] %v2162_v37  ;;  %2624 = vst [vmem:[#allocation14_spill] sm:$0xff] %v2165_v61  ;;  %v409_v39 = vmul.f32 0.00390625, %v371_v31  ;;  %611 = vadd.xlane.f32.xlu1 %v610_v33  ;;  %614 = vadd.xlane.f32.xlu0 %v613_v16  ;;  %v374_v62 = vpop.xlane.xlu1 %373  ;;  %v529_v43 = vmul.f32 %v2162_v37, %v2162_v37  ;;  %v530_v51 = vmul.f32 %v2165_v61, %v2165_v61  ;;  %v2631_v33 = vld [vmem:[#allocation18_spill] sm:$0xff]  ;;  %v2635_v31 = vld [vmem:[#allocation20_spill] sm:$0xff] }
 0x123   : > { %2626 = vst [vmem:[#allocation15_spill] sm:$0xff] %v2168_v63  ;;  %2628 = vst [vmem:[#allocation16_spill] sm:$0xff] %v2171_v60  ;;  %v410_v45 = vmul.f32 0.00390625, %v374_v62  ;;  %v531_v28 = vmul.f32 %v2168_v63, %v2168_v63  ;;  %v532_v29 = vmul.f32 %v2171_v60, %v2171_v60  ;;  %v2646_v60 = vld [vmem:[#allocation26_spill] sm:$0xff] }
 0x124   : > { %v2182_v17 = vsub.f32 %v2629_v49, %v409_v39  ;;  %v2185_v16 = vsub.f32 %v2631_v33, %v409_v39  ;;  %v619_v10 = vadd.f32 %v530_v51, %v529_v43 }
 0x125   : > { %v2188_v57 = vsub.f32 %v2633_v11, %v410_v45  ;;  %v2191_v37 = vsub.f32 %v2635_v31, %v410_v45  ;;  %v377_v62 = vpop.xlane.xlu0 %376  ;;  %v622_v55 = vadd.f32 %v532_v29, %v531_v28  ;;  %v2641_v11 = vld [vmem:[#allocation22_spill] sm:$0xff] }
 0x126   : > { %2630 = vst [vmem:[#allocation17_spill] sm:$0xff] %v2182_v17  ;;  %2632 = vst [vmem:[#allocation18_spill] sm:$0xff] %v2185_v16  ;;  %v411_v61 = vmul.f32 0.00390625, %v377_v62  ;;  %617 = vadd.xlane.f32.xlu1 %v616_v56  ;;  %620 = vadd.xlane.f32.xlu0 %v619_v10  ;;  %v380_v63 = vpop.xlane.xlu1 %379  ;;  %v533_v49 = vmul.f32 %v2182_v17, %v2182_v17  ;;  %v534_v39 = vmul.f32 %v2185_v16, %v2185_v16  ;;  %v2638_v56 = vld [vmem:[#allocation21_spill] sm:$0xff] }
 0x127   : > { %2634 = vst [vmem:[#allocation19_spill] sm:$0xff] %v2188_v57  ;;  %2636 = vst [vmem:[#allocation20_spill] sm:$0xff] %v2191_v37  ;;  %v412_v33 = vmul.f32 0.00390625, %v380_v63  ;;  %v535_v43 = vmul.f32 %v2188_v57, %v2188_v57  ;;  %v536_v51 = vmul.f32 %v2191_v37, %v2191_v37 }
 0x128   : > { %v2202_v45 = vsub.f32 %v1886_v41, %v411_v61  ;;  %v2205_v10 = vsub.f32 %v2638_v56, %v411_v61  ;;  %v625_v28 = vadd.f32 %v534_v39, %v533_v49 }
 0x129   : > { %v2208_v29 = vsub.f32 %v1892_v53, %v412_v33  ;;  %v2211_v31 = vsub.f32 %v2641_v11, %v412_v33  ;;  %v628_v63 = vadd.f32 %v536_v51, %v535_v43  ;;  %v801_v43 = vlaneseq }
 0x12a   : > { %2637 = vst [vmem:[#allocation32_spill] sm:$0xff] %v2202_v45  ;;  %2639 = vst [vmem:[#allocation21_spill] sm:$0xff] %v2205_v10  ;;  %623 = vadd.xlane.f32.xlu1 %v622_v55  ;;  %626 = vadd.xlane.f32.xlu0 %v625_v28  ;;  %v537_v62 = vmul.f32 %v2202_v45, %v2202_v45  ;;  %v538_v41 = vmul.f32 %v2205_v10, %v2205_v10 }
 0x12b   : > { %2640 = vst [vmem:[#allocation33_spill] sm:$0xff] %v2208_v29  ;;  %2642 = vst [vmem:[#allocation22_spill] sm:$0xff] %v2211_v31  ;;  %v539_v61 = vmul.f32 %v2208_v29, %v2208_v29  ;;  %v540_v49 = vmul.f32 %v2211_v31, %v2211_v31  ;;  %v802_v45 = vshrl.u32 %v801_v43, 7 }
 0x12c   : > { %v631_v53 = vadd.f32 %v538_v41, %v537_v62 }
 0x12d   : > { %v634_v39 = vadd.f32 %v540_v49, %v539_v61  ;;  %v733_v61 = vld [vmem:[%s1629_s27] ss:$2 sm:$0x3]  ;;  %v803_v49 = vsub.s32 0, %v802_v45 }
 0x12e   : > { %629 = vadd.xlane.f32.xlu1 %v628_v63  ;;  %632 = vadd.xlane.f32.xlu0 %v631_v53  ;;  %v807_v53 = vsub.s32 1, %v802_v45 }
 0x132   : > { %635 = vadd.xlane.f32.xlu1 %v634_v39 }
 0x17f   : > { %v543_v55 = vpop.xlane.xlu0 %542 }
 0x180   : > { %v637_v33 = vmul.f32 0.00390625, %v543_v55 }
 0x182   : > { %v669_v51 = vadd.f32 1e-05, %v637_v33 }
 0x183   : > { %v546_v56 = vpop.xlane.xlu1 %545  ;;  %v549_v28 = vpop.xlane.xlu0 %548 }
 0x184   : > { %1235 = vrsqrt.f32 %v669_v51  ;;  %v638_v11 = vmul.f32 0.00390625, %v546_v56  ;;  %v639_v10 = vmul.f32 0.00390625, %v549_v28  ;;  %v1155_v51 = vld [vmem:[%s1629_s27 + $0x1] ss:$2 sm:$0x3]  ;;  %v2223_v28 = vrot.slane %v733_v61, %v803_v49 }
 0x185   : > { %v2229_v45 = vrot.slane %v1155_v51, %v807_v53 }
 0x186   : > { %v670_v29 = vadd.f32 1e-05, %v638_v11  ;;  %v671_v37 = vadd.f32 1e-05, %v639_v10  ;;  %v2225_v10 = vrot.slane %v733_v61, %v807_v53 }
 0x187   : > { %v552_v31 = vpop.xlane.xlu1 %551  ;;  %v555_v62 = vpop.xlane.xlu0 %554 }
 0x188   : > { %1237 = vrsqrt.f32 %v670_v29  ;;  %v640_v63 = vmul.f32 0.00390625, %v552_v31  ;;  %v641_v41 = vmul.f32 0.00390625, %v555_v62  ;;  %v2227_v62 = vrot.slane %v1155_v51, %v803_v49 }
 0x189   : > { %1239 = vrsqrt.f32 %v671_v37  ;;  %v2643_v37 = vld [vmem:[#allocation23_spill] sm:$0xff] }
 0x18a   : > { %v672_v39 = vadd.f32 1e-05, %v640_v63  ;;  %v673_v55 = vadd.f32 1e-05, %v641_v41  ;;  %v2644_v41 = vld [vmem:[#allocation24_spill] sm:$0xff] }
 0x18b   : > { %v558_v33 = vpop.xlane.xlu1 %557  ;;  %v561_v57 = vpop.xlane.xlu0 %560 }
 0x18c   : > { %1241 = vrsqrt.f32 %v672_v39  ;;  %v642_v56 = vmul.f32 0.00390625, %v558_v33  ;;  %v643_v43 = vmul.f32 0.00390625, %v561_v57 }
 0x18d   : > { %1243 = vrsqrt.f32 %v673_v55 }
 0x18e   : > { %v1236_v29 = vpop.eup %1235  ;;  %v674_v31 = vadd.f32 1e-05, %v642_v56  ;;  %v675_v11 = vadd.f32 1e-05, %v643_v43 }
 0x18f   : > { %v736_v63 = vmul.f32 %v1236_v29, %v2643_v37  ;;  %v737_v16 = vmul.f32 %v1236_v29, %v2644_v41  ;;  %v564_v17 = vpop.xlane.xlu1 %563  ;;  %v567_v39 = vpop.xlane.xlu0 %566 }
 0x190   : > { %1245 = vrsqrt.f32 %v674_v31  ;;  %v644_v57 = vmul.f32 0.00390625, %v564_v17  ;;  %v645_v33 = vmul.f32 0.00390625, %v567_v39  ;;  %v2645_v39 = vld [vmem:[#allocation25_spill] sm:$0xff] }
 0x191   : > { %v811_v61 = vmul.f32 %v2223_v28, %v736_v63  ;;  %v812_v55 = vmul.f32 %v2225_v10, %v737_v16  ;;  %1247 = vrsqrt.f32 %v675_v11 }
 0x192   : > { %v1238_v56 = vpop.eup %1237  ;;  %v676_v49 = vadd.f32 1e-05, %v644_v57  ;;  %v677_v43 = vadd.f32 1e-05, %v645_v33 }
 0x193   : > { %v1240_v53 = vpop.eup %1239  ;;  %v886_v51 = vadd.f32 %v2227_v62, %v811_v61  ;;  %v887_v37 = vadd.f32 %v2229_v45, %v812_v55  ;;  %v738_v29 = vmul.f32 %v1238_v56, %v1922_v23  ;;  %v739_v31 = vmul.f32 %v1238_v56, %v1925_v4  ;;  %v570_v17 = vpop.xlane.xlu1 %569 }
 0x194   : > { %v573_v41 = vpop.xlane.xlu0 %572  ;;  %v740_v63 = vmul.f32 %v1240_v53, %v2645_v39  ;;  %v741_v16 = vmul.f32 %v1240_v53, %v2646_v60  ;;  %1249 = vrsqrt.f32 %v676_v49  ;;  %v646_v11 = vmul.f32 0.00390625, %v570_v17 }
 0x195   : > { %950 = vst [vmem:[%s2243_s21] sm:$0xff] %v886_v51  ;;  %951 = vst [vmem:[%s2243_s21 + $0x8] sm:$0xff] %v887_v37  ;;  %v813_v57 = vmul.f32 %v2223_v28, %v738_v29  ;;  %v814_v23 = vmul.f32 %v2225_v10, %v739_v31  ;;  %1251 = vrsqrt.f32 %v677_v43  ;;  %v647_v4 = vmul.f32 0.00390625, %v573_v41 }
 0x196   : > { %v1242_v33 = vpop.eup %1241  ;;  %v815_v60 = vmul.f32 %v2223_v28, %v740_v63  ;;  %v816_v61 = vmul.f32 %v2225_v10, %v741_v16  ;;  %v678_v55 = vadd.f32 1e-05, %v646_v11 }
 0x197   : > { %v1244_v56 = vpop.eup %1243  ;;  %v888_v49 = vadd.f32 %v2227_v62, %v813_v57  ;;  %v889_v53 = vadd.f32 %v2229_v45, %v814_v23  ;;  %v742_v51 = vmul.f32 %v1242_v33, %v1928_v7  ;;  %v743_v43 = vmul.f32 %v1242_v33, %v1931_v59  ;;  %v576_v37 = vpop.xlane.xlu1 %575 }
 0x198   : > { %v579_v29 = vpop.xlane.xlu0 %578  ;;  %v890_v31 = vadd.f32 %v2227_v62, %v815_v60  ;;  %v891_v17 = vadd.f32 %v2229_v45, %v816_v61  ;;  %v744_v41 = vmul.f32 %v1244_v56, %v1942_v9  ;;  %v745_v39 = vmul.f32 %v1244_v56, %v1945_v58 }
 0x199   : > { %952 = vst [vmem:[%s2243_s21 + $0x10] sm:$0xff] %v888_v49  ;;  %953 = vst [vmem:[%s2243_s21 + $0x18] sm:$0xff] %v889_v53  ;;  %v817_v63 = vmul.f32 %v2223_v28, %v742_v51  ;;  %v818_v16 = vmul.f32 %v2225_v10, %v743_v43  ;;  %1253 = vrsqrt.f32 %v678_v55  ;;  %v679_v7 = vadd.f32 1e-05, %v647_v4 }
 0x19a   : > { %v1246_v11 = vpop.eup %1245  ;;  %954 = vst [vmem:[%s2243_s21 + $0x20] sm:$0xff] %v890_v31  ;;  %955 = vst [vmem:[%s2243_s21 + $0x28] sm:$0xff] %v891_v17  ;;  %v819_v59 = vmul.f32 %v2223_v28, %v744_v41  ;;  %v820_v57 = vmul.f32 %v2225_v10, %v745_v39  ;;  %v648_v9 = vmul.f32 0.00390625, %v576_v37  ;;  %v649_v23 = vmul.f32 0.00390625, %v579_v29 }
 0x19b   : > { %v1248_v58 = vpop.eup %1247  ;;  %v892_v33 = vadd.f32 %v2227_v62, %v817_v63  ;;  %v893_v60 = vadd.f32 %v2229_v45, %v818_v16  ;;  %v746_v61 = vmul.f32 %v1246_v11, %v1948_v0  ;;  %v747_v4 = vmul.f32 %v1246_v11, %v1951_v1  ;;  %v582_v55 = vpop.xlane.xlu1 %581 }
 0x19c   : > { %v585_v56 = vpop.xlane.xlu0 %584  ;;  %v894_v49 = vadd.f32 %v2227_v62, %v819_v59  ;;  %v895_v53 = vadd.f32 %v2229_v45, %v820_v57  ;;  %v748_v51 = vmul.f32 %v1248_v58, %v1962_v40  ;;  %v749_v43 = vmul.f32 %v1248_v58, %v1965_v3 }
 0x19d   : > { %956 = vst [vmem:[%s2243_s21 + $0x30] sm:$0xff] %v892_v33  ;;  %957 = vst [vmem:[%s2243_s21 + $0x38] sm:$0xff] %v893_v60  ;;  %v821_v37 = vmul.f32 %v2223_v28, %v746_v61  ;;  %v822_v29 = vmul.f32 %v2225_v10, %v747_v4  ;;  %1255 = vrsqrt.f32 %v679_v7  ;;  %v680_v0 = vadd.f32 1e-05, %v648_v9 }
 0x19e   : > { %v1250_v31 = vpop.eup %1249  ;;  %958 = vst [vmem:[%s2243_s21 + $0x40] sm:$0xff] %v894_v49  ;;  %959 = vst [vmem:[%s2243_s21 + $0x48] sm:$0xff] %v895_v53  ;;  %v823_v1 = vmul.f32 %v2223_v28, %v748_v51  ;;  %v824_v17 = vmul.f32 %v2225_v10, %v749_v43  ;;  %v681_v40 = vadd.f32 1e-05, %v649_v23  ;;  %v650_v41 = vmul.f32 0.00390625, %v582_v55 }
 0x19f   : > { %v1252_v3 = vpop.eup %1251  ;;  %v896_v39 = vadd.f32 %v2227_v62, %v821_v37  ;;  %v897_v63 = vadd.f32 %v2229_v45, %v822_v29  ;;  %v750_v16 = vmul.f32 %v1250_v31, %v1968_v6  ;;  %v751_v7 = vmul.f32 %v1250_v31, %v1971_v52  ;;  %v588_v11 = vpop.xlane.xlu1 %587 }
 0x1a0   : > { %v591_v59 = vpop.xlane.xlu0 %590  ;;  %v898_v57 = vadd.f32 %v2227_v62, %v823_v1  ;;  %v899_v9 = vadd.f32 %v2229_v45, %v824_v17  ;;  %v752_v23 = vmul.f32 %v1252_v3, %v1982_v12  ;;  %v753_v58 = vmul.f32 %v1252_v3, %v1985_v46 }
 0x1a1   : > { %960 = vst [vmem:[%s2243_s21 + $0x50] sm:$0xff] %v896_v39  ;;  %961 = vst [vmem:[%s2243_s21 + $0x58] sm:$0xff] %v897_v63  ;;  %v825_v33 = vmul.f32 %v2223_v28, %v750_v16  ;;  %v826_v60 = vmul.f32 %v2225_v10, %v751_v7  ;;  %1257 = vrsqrt.f32 %v680_v0  ;;  %v682_v6 = vadd.f32 1e-05, %v650_v41 }
 0x1a2   : > { %962 = vst [vmem:[%s2243_s21 + $0x60] sm:$0xff] %v898_v57  ;;  %963 = vst [vmem:[%s2243_s21 + $0x68] sm:$0xff] %v899_v9  ;;  %v827_v52 = vmul.f32 %v2223_v28, %v752_v23  ;;  %v828_v61 = vmul.f32 %v2225_v10, %v753_v58  ;;  %1259 = vrsqrt.f32 %v681_v40  ;;  %v651_v12 = vmul.f32 0.00390625, %v585_v56 }
 0x1a3   : > { %v1254_v4 = vpop.eup %1253  ;;  %v900_v46 = vadd.f32 %v2227_v62, %v825_v33  ;;  %v901_v55 = vadd.f32 %v2229_v45, %v826_v60  ;;  %1261 = vrsqrt.f32 %v682_v6  ;;  %v652_v49 = vmul.f32 0.00390625, %v588_v11  ;;  %v594_v53 = vpop.xlane.xlu1 %593 }
 0x1a4   : > { %v597_v51 = vpop.xlane.xlu0 %596  ;;  %v902_v43 = vadd.f32 %v2227_v62, %v827_v52  ;;  %v903_v37 = vadd.f32 %v2229_v45, %v828_v61  ;;  %v754_v29 = vmul.f32 %v1254_v4, %v1988_v34  ;;  %v755_v0 = vmul.f32 %v1254_v4, %v1991_v14 }
 0x1a5   : > { %964 = vst [vmem:[%s2243_s21 + $0x70] sm:$0xff] %v900_v46  ;;  %965 = vst [vmem:[%s2243_s21 + $0x78] sm:$0xff] %v901_v55  ;;  %v683_v56 = vadd.f32 1e-05, %v651_v12  ;;  %v684_v31 = vadd.f32 1e-05, %v652_v49 }
 0x1a6   : > { %v653_v1 = vmul.f32 0.00390625, %v591_v59  ;;  %v654_v17 = vmul.f32 0.00390625, %v594_v53  ;;  %966 = vst [vmem:[%s2243_s21 + $0x80] sm:$0xff] %v902_v43  ;;  %967 = vst [vmem:[%s2243_s21 + $0x88] sm:$0xff] %v903_v37  ;;  %v829_v40 = vmul.f32 %v2223_v28, %v754_v29  ;;  %v830_v41 = vmul.f32 %v2225_v10, %v755_v0 }
 0x1a7   : > { %v655_v3 = vmul.f32 0.00390625, %v597_v51  ;;  %v1256_v39 = vpop.eup %1255  ;;  %1263 = vrsqrt.f32 %v683_v56  ;;  %v600_v14 = vpop.xlane.xlu1 %599 }
 0x1a8   : > { %v685_v34 = vadd.f32 1e-05, %v653_v1  ;;  %v686_v63 = vadd.f32 1e-05, %v654_v17  ;;  %v603_v16 = vpop.xlane.xlu0 %602  ;;  %v904_v7 = vadd.f32 %v2227_v62, %v829_v40  ;;  %v905_v11 = vadd.f32 %v2229_v45, %v830_v41 }
 0x1a9   : > { %v756_v59 = vmul.f32 %v1256_v39, %v2002_v18  ;;  %v757_v57 = vmul.f32 %v1256_v39, %v2005_v47  ;;  %1265 = vrsqrt.f32 %v684_v31  ;;  %v687_v9 = vadd.f32 1e-05, %v655_v3 }
 0x1aa   : > { %v656_v23 = vmul.f32 0.00390625, %v600_v14  ;;  %v657_v58 = vmul.f32 0.00390625, %v603_v16  ;;  %968 = vst [vmem:[%s2243_s21 + $0x90] sm:$0xff] %v904_v7  ;;  %969 = vst [vmem:[%s2243_s21 + $0x98] sm:$0xff] %v905_v11  ;;  %1267 = vrsqrt.f32 %v685_v34 }
 0x1ab   : > { %v831_v33 = vmul.f32 %v2223_v28, %v756_v59  ;;  %v832_v60 = vmul.f32 %v2225_v10, %v757_v57  ;;  %v1258_v6 = vpop.eup %1257  ;;  %1269 = vrsqrt.f32 %v686_v63  ;;  %v606_v18 = vpop.xlane.xlu1 %605 }
 0x1ac   : > { %v688_v52 = vadd.f32 1e-05, %v656_v23  ;;  %v689_v61 = vadd.f32 1e-05, %v657_v58  ;;  %v609_v12 = vpop.xlane.xlu0 %608  ;;  %v1260_v47 = vpop.eup %1259  ;;  %v758_v55 = vmul.f32 %v1258_v6, %v2008_v2  ;;  %v759_v49 = vmul.f32 %v1258_v6, %v2011_v20 }
 0x1ad   : > { %v906_v4 = vadd.f32 %v2227_v62, %v831_v33  ;;  %v907_v46 = vadd.f32 %v2229_v45, %v832_v60  ;;  %v1262_v53 = vpop.eup %1261  ;;  %v760_v51 = vmul.f32 %v1260_v47, %v2022_v24  ;;  %v761_v43 = vmul.f32 %v1260_v47, %v2025_v35 }
 0x1ae   : > { %1271 = vrsqrt.f32 %v687_v9  ;;  %v658_v37 = vmul.f32 0.00390625, %v606_v18  ;;  %v833_v29 = vmul.f32 %v2223_v28, %v758_v55  ;;  %v834_v0 = vmul.f32 %v2225_v10, %v759_v49 }
 0x1af   : > { %970 = vst [vmem:[%s2243_s21 + $0xa0] sm:$0xff] %v906_v4  ;;  %971 = vst [vmem:[%s2243_s21 + $0xa8] sm:$0xff] %v907_v46  ;;  %v762_v56 = vmul.f32 %v1262_v53, %v2028_v22  ;;  %v763_v31 = vmul.f32 %v1262_v53, %v2031_v26  ;;  %v835_v2 = vmul.f32 %v2223_v28, %v760_v51  ;;  %1273 = vrsqrt.f32 %v688_v52  ;;  %v612_v35 = vpop.xlane.xlu1 %611 }
 0x1b0   : > { %v836_v20 = vmul.f32 %v2225_v10, %v761_v43  ;;  %v690_v24 = vadd.f32 1e-05, %v658_v37  ;;  %v908_v1 = vadd.f32 %v2227_v62, %v833_v29  ;;  %v909_v17 = vadd.f32 %v2229_v45, %v834_v0  ;;  %v615_v26 = vpop.xlane.xlu0 %614 }
 0x1b1   : > { %v837_v40 = vmul.f32 %v2223_v28, %v762_v56  ;;  %v838_v22 = vmul.f32 %v2225_v10, %v763_v31  ;;  %v1264_v41 = vpop.eup %1263  ;;  %v910_v3 = vadd.f32 %v2227_v62, %v835_v2  ;;  %1275 = vrsqrt.f32 %v689_v61 }
 0x1b2   : > { %v911_v39 = vadd.f32 %v2229_v45, %v836_v20  ;;  %v659_v34 = vmul.f32 0.00390625, %v609_v12  ;;  %972 = vst [vmem:[%s2243_s21 + $0xb0] sm:$0xff] %v908_v1  ;;  %973 = vst [vmem:[%s2243_s21 + $0xb8] sm:$0xff] %v909_v17  ;;  %v764_v16 = vmul.f32 %v1264_v41, %v2042_v30  ;;  %v765_v7 = vmul.f32 %v1264_v41, %v2045_v8 }
 0x1b3   : > { %v912_v63 = vadd.f32 %v2227_v62, %v837_v40  ;;  %v913_v14 = vadd.f32 %v2229_v45, %v838_v22  ;;  %v1266_v11 = vpop.eup %1265  ;;  %974 = vst [vmem:[%s2243_s21 + $0xc0] sm:$0xff] %v910_v3  ;;  %1277 = vrsqrt.f32 %v690_v24  ;;  %v660_v57 = vmul.f32 0.00390625, %v612_v35  ;;  %v618_v23 = vpop.xlane.xlu1 %617 }
 0x1b4   : > { %975 = vst [vmem:[%s2243_s21 + $0xc8] sm:$0xff] %v911_v39  ;;  %v691_v59 = vadd.f32 1e-05, %v659_v34  ;;  %v661_v9 = vmul.f32 0.00390625, %v615_v26  ;;  %v1268_v58 = vpop.eup %1267  ;;  %v839_v33 = vmul.f32 %v2223_v28, %v764_v16  ;;  %v840_v60 = vmul.f32 %v2225_v10, %v765_v7 }
 0x1b5   : > { %976 = vst [vmem:[%s2243_s21 + $0xd0] sm:$0xff] %v912_v63  ;;  %977 = vst [vmem:[%s2243_s21 + $0xd8] sm:$0xff] %v913_v14  ;;  %v766_v6 = vmul.f32 %v1266_v11, %v2048_v5  ;;  %v767_v30 = vmul.f32 %v1266_v11, %v2051_v32  ;;  %v1270_v8 = vpop.eup %1269  ;;  %v768_v52 = vmul.f32 %v1268_v58, %v2062_v36  ;;  %v692_v18 = vadd.f32 1e-05, %v660_v57  ;;  %v621_v5 = vpop.xlane.xlu0 %620 }
 0x1b6   : > { %v769_v61 = vmul.f32 %v1268_v58, %v2065_v15  ;;  %1279 = vrsqrt.f32 %v691_v59  ;;  %v914_v12 = vadd.f32 %v2227_v62, %v839_v33  ;;  %v915_v47 = vadd.f32 %v2229_v45, %v840_v60  ;;  %v2647_v33 = vld [vmem:[#allocation27_spill] sm:$0xff] }
 0x1b7   : > { %v841_v4 = vmul.f32 %v2223_v28, %v766_v6  ;;  %v842_v46 = vmul.f32 %v2225_v10, %v767_v30  ;;  %v843_v32 = vmul.f32 %v2223_v28, %v768_v52  ;;  %v770_v36 = vmul.f32 %v1270_v8, %v2068_v13  ;;  %v624_v29 = vpop.xlane.xlu1 %623 }
 0x1b8   : > { %v1272_v55 = vpop.eup %1271  ;;  %v844_v49 = vmul.f32 %v2225_v10, %v769_v61  ;;  %v771_v15 = vmul.f32 %v1270_v8, %v2071_v38  ;;  %978 = vst [vmem:[%s2243_s21 + $0xe0] sm:$0xff] %v914_v12  ;;  %979 = vst [vmem:[%s2243_s21 + $0xe8] sm:$0xff] %v915_v47  ;;  %1281 = vrsqrt.f32 %v692_v18  ;;  %v693_v17 = vadd.f32 1e-05, %v661_v9 }
 0x1b9   : > { %v916_v53 = vadd.f32 %v2227_v62, %v841_v4  ;;  %v917_v51 = vadd.f32 %v2229_v45, %v842_v46  ;;  %v772_v43 = vmul.f32 %v1272_v55, %v2082_v42  ;;  %v773_v37 = vmul.f32 %v1272_v55, %v2085_v21  ;;  %v1274_v0 = vpop.eup %1273 }
 0x1ba   : > { %v918_v56 = vadd.f32 %v2227_v62, %v843_v32  ;;  %v919_v13 = vadd.f32 %v2229_v45, %v844_v49  ;;  %v845_v38 = vmul.f32 %v2223_v28, %v770_v36  ;;  %v846_v31 = vmul.f32 %v2225_v10, %v771_v15 }
 0x1bb   : > { %980 = vst [vmem:[%s2243_s21 + $0xf0] sm:$0xff] %v916_v53  ;;  %981 = vst [vmem:[%s2243_s21 + $0xf8] sm:$0xff] %v917_v51  ;;  %v847_v2 = vmul.f32 %v2223_v28, %v772_v43  ;;  %v848_v20 = vmul.f32 %v2225_v10, %v773_v37  ;;  %v774_v42 = vmul.f32 %v1274_v0, %v2088_v19  ;;  %v1276_v24 = vpop.eup %1275  ;;  %1283 = vrsqrt.f32 %v693_v17  ;;  %v630_v11 = vpop.xlane.xlu1 %629  ;;  %v2648_v53 = vld [vmem:[#allocation28_spill] sm:$0xff]  ;;  %v2649_v43 = vld [vmem:[#allocation29_spill] sm:$0xff] }
 0x1bc   : > { %v775_v21 = vmul.f32 %v1274_v0, %v2091_v44  ;;  %982 = vst [vmem:[%s2243_s21 + $0x100] sm:$0xff] %v918_v56  ;;  %983 = vst [vmem:[%s2243_s21 + $0x108] sm:$0xff] %v919_v13  ;;  %v920_v35 = vadd.f32 %v2227_v62, %v845_v38  ;;  %v921_v1 = vadd.f32 %v2229_v45, %v846_v31  ;;  %v627_v44 = vpop.xlane.xlu0 %626  ;;  %v662_v34 = vmul.f32 0.00390625, %v618_v23  ;;  %v2650_v31 = vld [vmem:[#allocation30_spill] sm:$0xff] }
 0x1bd   : > { %v922_v40 = vadd.f32 %v2227_v62, %v847_v2  ;;  %v923_v22 = vadd.f32 %v2229_v45, %v848_v20  ;;  %v849_v19 = vmul.f32 %v2223_v28, %v774_v42  ;;  %v1278_v41 = vpop.eup %1277  ;;  %v776_v3 = vmul.f32 %v1276_v24, %v2102_v48  ;;  %v2651_v20 = vld [vmem:[#allocation31_spill] sm:$0xff] }
 0x1be   : > { %v850_v26 = vmul.f32 %v2225_v10, %v775_v21  ;;  %984 = vst [vmem:[%s2243_s21 + $0x110] sm:$0xff] %v920_v35  ;;  %985 = vst [vmem:[%s2243_s21 + $0x118] sm:$0xff] %v921_v1  ;;  %v777_v39 = vmul.f32 %v1276_v24, %v2105_v27  ;;  %v778_v16 = vmul.f32 %v1278_v41, %v2108_v25  ;;  %v694_v27 = vadd.f32 1e-05, %v662_v34 }
 0x1bf   : > { %986 = vst [vmem:[%s2243_s21 + $0x120] sm:$0xff] %v922_v40  ;;  %987 = vst [vmem:[%s2243_s21 + $0x128] sm:$0xff] %v923_v22  ;;  %v924_v63 = vadd.f32 %v2227_v62, %v849_v19  ;;  %v779_v7 = vmul.f32 %v1278_v41, %v2111_v50  ;;  %v851_v48 = vmul.f32 %v2223_v28, %v776_v3  ;;  %v663_v9 = vmul.f32 0.00390625, %v621_v5  ;;  %v636_v55 = vpop.xlane.xlu1 %635  ;;  %v2653_v3 = vld [vmem:[#allocation12_spill] sm:$0xff] }
 0x1c0   : > { %v925_v14 = vadd.f32 %v2229_v45, %v850_v26  ;;  %v1280_v59 = vpop.eup %1279  ;;  %v852_v57 = vmul.f32 %v2225_v10, %v777_v39  ;;  %v853_v23 = vmul.f32 %v2223_v28, %v778_v16  ;;  %1285 = vrsqrt.f32 %v694_v27  ;;  %v633_v12 = vpop.xlane.xlu0 %632  ;;  %v2654_v16 = vld [vmem:[#allocation13_spill] sm:$0xff] }
 0x1c1   : > { %988 = vst [vmem:[%s2243_s21 + $0x130] sm:$0xff] %v924_v63  ;;  %v854_v58 = vmul.f32 %v2225_v10, %v779_v7  ;;  %v780_v25 = vmul.f32 %v1280_v59, %v2122_v54  ;;  %v781_v50 = vmul.f32 %v1280_v59, %v2647_v33  ;;  %v926_v60 = vadd.f32 %v2227_v62, %v851_v48  ;;  %v2656_v33 = vld [vmem:[#allocation15_spill] sm:$0xff] }
 0x1c2   : > { %989 = vst [vmem:[%s2243_s21 + $0x138] sm:$0xff] %v925_v14  ;;  %v927_v6 = vadd.f32 %v2229_v45, %v852_v57  ;;  %v695_v30 = vadd.f32 1e-05, %v663_v9  ;;  %v928_v8 = vadd.f32 %v2227_v62, %v853_v23  ;;  %v664_v54 = vmul.f32 0.00390625, %v624_v29  ;;  %v1282_v32 = vpop.eup %1281 }
 0x1c3   : > { %v929_v52 = vadd.f32 %v2229_v45, %v854_v58  ;;  %v855_v61 = vmul.f32 %v2223_v28, %v780_v25  ;;  %v856_v18 = vmul.f32 %v2225_v10, %v781_v50  ;;  %990 = vst [vmem:[%s2243_s21 + $0x140] sm:$0xff] %v926_v60  ;;  %v665_v47 = vmul.f32 0.00390625, %v627_v44  ;;  %v2652_v44 = vld [vmem:[#allocation11_spill] sm:$0xff]  ;;  %v2657_v60 = vld [vmem:[#allocation16_spill] sm:$0xff] }
 0x1c4   : > { %991 = vst [vmem:[%s2243_s21 + $0x148] sm:$0xff] %v927_v6  ;;  %1287 = vrsqrt.f32 %v695_v30  ;;  %v666_v4 = vmul.f32 0.00390625, %v630_v11  ;;  %992 = vst [vmem:[%s2243_s21 + $0x150] sm:$0xff] %v928_v8  ;;  %v696_v49 = vadd.f32 1e-05, %v664_v54  ;;  %v667_v15 = vmul.f32 0.00390625, %v633_v12 }
 0x1c5   : > { %993 = vst [vmem:[%s2243_s21 + $0x158] sm:$0xff] %v929_v52  ;;  %v930_v46 = vadd.f32 %v2227_v62, %v855_v61  ;;  %v931_v5 = vadd.f32 %v2229_v45, %v856_v18  ;;  %v697_v36 = vadd.f32 1e-05, %v665_v47  ;;  %v782_v51 = vmul.f32 %v1282_v32, %v2648_v53  ;;  %v1284_v29 = vpop.eup %1283  ;;  %v2655_v11 = vld [vmem:[#allocation14_spill] sm:$0xff]  ;;  %v2658_v61 = vld [vmem:[#allocation17_spill] sm:$0xff] }
 0x1c6   : > { %v783_v37 = vmul.f32 %v1282_v32, %v2649_v43  ;;  %1289 = vrsqrt.f32 %v696_v49  ;;  %v698_v0 = vadd.f32 1e-05, %v666_v4  ;;  %v668_v56 = vmul.f32 0.00390625, %v636_v55  ;;  %v2659_v12 = vld [vmem:[#allocation18_spill] sm:$0xff]  ;;  %v2660_v49 = vld [vmem:[#allocation19_spill] sm:$0xff] }
 0x1c7   : > { %994 = vst [vmem:[%s2243_s21 + $0x160] sm:$0xff] %v930_v46  ;;  %995 = vst [vmem:[%s2243_s21 + $0x168] sm:$0xff] %v931_v5  ;;  %v857_v13 = vmul.f32 %v2223_v28, %v782_v51  ;;  %v784_v2 = vmul.f32 %v1284_v29, %v2650_v31  ;;  %v785_v42 = vmul.f32 %v1284_v29, %v2651_v20  ;;  %1291 = vrsqrt.f32 %v697_v36 }
 0x1c8   : > { %v858_v38 = vmul.f32 %v2225_v10, %v783_v37  ;;  %v699_v21 = vadd.f32 1e-05, %v667_v15  ;;  %1293 = vrsqrt.f32 %v698_v0  ;;  %v700_v22 = vadd.f32 1e-05, %v668_v56  ;;  %v2661_v15 = vld [vmem:[#allocation20_spill] sm:$0xff]  ;;  %v2663_v0 = vld [vmem:[#allocation21_spill] sm:$0xff] }
 0x1c9   : > { %v932_v24 = vadd.f32 %v2227_v62, %v857_v13  ;;  %v859_v1 = vmul.f32 %v2223_v28, %v784_v2  ;;  %v860_v17 = vmul.f32 %v2225_v10, %v785_v42  ;;  %v2662_v37 = vld [vmem:[#allocation32_spill] sm:$0xff]  ;;  %v2664_v42 = vld [vmem:[#allocation33_spill] sm:$0xff] }
 0x1ca   : > { %v933_v35 = vadd.f32 %v2229_v45, %v858_v38  ;;  %v1286_v40 = vpop.eup %1285  ;;  %1295 = vrsqrt.f32 %v699_v21 }
 0x1cb   : > { %996 = vst [vmem:[%s2243_s21 + $0x170] sm:$0xff] %v932_v24  ;;  %v934_v19 = vadd.f32 %v2227_v62, %v859_v1  ;;  %v935_v26 = vadd.f32 %v2229_v45, %v860_v17  ;;  %v786_v41 = vmul.f32 %v1286_v40, %v2652_v44  ;;  %v787_v39 = vmul.f32 %v1286_v40, %v2653_v3  ;;  %v2665_v24 = vld [vmem:[#allocation22_spill] sm:$0xff] }
 0x1cc   : > { %997 = vst [vmem:[%s2243_s21 + $0x178] sm:$0xff] %v933_v35  ;;  %1297 = vrsqrt.f32 %v700_v22 }
 0x1cd   : > { %998 = vst [vmem:[%s2243_s21 + $0x180] sm:$0xff] %v934_v19  ;;  %999 = vst [vmem:[%s2243_s21 + $0x188] sm:$0xff] %v935_v26  ;;  %v861_v63 = vmul.f32 %v2223_v28, %v786_v41  ;;  %v862_v14 = vmul.f32 %v2225_v10, %v787_v39 }
 0x1ce   : > { %v1288_v34 = vpop.eup %1287 }
 0x1cf   : > { %v788_v7 = vmul.f32 %v1288_v34, %v2654_v16  ;;  %v789_v59 = vmul.f32 %v1288_v34, %v2655_v11  ;;  %v936_v48 = vadd.f32 %v2227_v62, %v861_v63  ;;  %v937_v57 = vadd.f32 %v2229_v45, %v862_v14 }
 0x1d0   : > { %v1290_v23 = vpop.eup %1289 }
 0x1d1   : > { %v863_v27 = vmul.f32 %v2223_v28, %v788_v7  ;;  %v864_v9 = vmul.f32 %v2225_v10, %v789_v59  ;;  %1000 = vst [vmem:[%s2243_s21 + $0x190] sm:$0xff] %v936_v48  ;;  %1001 = vst [vmem:[%s2243_s21 + $0x198] sm:$0xff] %v937_v57  ;;  %v790_v50 = vmul.f32 %v1290_v23, %v2656_v33  ;;  %v1292_v30 = vpop.eup %1291 }
 0x1d2   : > { %v791_v6 = vmul.f32 %v1290_v23, %v2657_v60  ;;  %v792_v18 = vmul.f32 %v1292_v30, %v2658_v61  ;;  %v793_v54 = vmul.f32 %v1292_v30, %v2659_v12  ;;  %v1294_v47 = vpop.eup %1293 }
 0x1d3   : > { %v938_v58 = vadd.f32 %v2227_v62, %v863_v27  ;;  %v939_v25 = vadd.f32 %v2229_v45, %v864_v9  ;;  %v865_v8 = vmul.f32 %v2223_v28, %v790_v50  ;;  %v794_v36 = vmul.f32 %v1294_v47, %v2660_v49 }
 0x1d4   : > { %v866_v52 = vmul.f32 %v2225_v10, %v791_v6  ;;  %v867_v5 = vmul.f32 %v2223_v28, %v792_v18  ;;  %v868_v55 = vmul.f32 %v2225_v10, %v793_v54  ;;  %v1296_v32 = vpop.eup %1295  ;;  %v795_v53 = vmul.f32 %v1294_v47, %v2661_v15 }
 0x1d5   : > { %1002 = vst [vmem:[%s2243_s21 + $0x1a0] sm:$0xff] %v938_v58  ;;  %1003 = vst [vmem:[%s2243_s21 + $0x1a8] sm:$0xff] %v939_v25  ;;  %v940_v4 = vadd.f32 %v2227_v62, %v865_v8  ;;  %v796_v29 = vmul.f32 %v1296_v32, %v2662_v37  ;;  %v797_v56 = vmul.f32 %v1296_v32, %v2663_v0 }
 0x1d6   : > { %v941_v46 = vadd.f32 %v2229_v45, %v866_v52  ;;  %v942_v51 = vadd.f32 %v2227_v62, %v867_v5  ;;  %v943_v43 = vadd.f32 %v2229_v45, %v868_v55  ;;  %v1298_v13 = vpop.eup %1297  ;;  %v869_v38 = vmul.f32 %v2223_v28, %v794_v36 }
 0x1d7   : > { %1004 = vst [vmem:[%s2243_s21 + $0x1b0] sm:$0xff] %v940_v4  ;;  %v870_v31 = vmul.f32 %v2225_v10, %v795_v53  ;;  %v871_v2 = vmul.f32 %v2223_v28, %v796_v29  ;;  %v872_v20 = vmul.f32 %v2225_v10, %v797_v56  ;;  %v798_v21 = vmul.f32 %v1298_v13, %v2664_v42 }
 0x1d8   : > { %1005 = vst [vmem:[%s2243_s21 + $0x1b8] sm:$0xff] %v941_v46  ;;  %1006 = vst [vmem:[%s2243_s21 + $0x1c0] sm:$0xff] %v942_v51  ;;  %v799_v35 = vmul.f32 %v1298_v13, %v2665_v24  ;;  %v944_v1 = vadd.f32 %v2227_v62, %v869_v38 }
 0x1d9   : > { %1007 = vst [vmem:[%s2243_s21 + $0x1c8] sm:$0xff] %v943_v43  ;;  %v945_v17 = vadd.f32 %v2229_v45, %v870_v31  ;;  %v946_v40 = vadd.f32 %v2227_v62, %v871_v2  ;;  %v947_v22 = vadd.f32 %v2229_v45, %v872_v20  ;;  %v873_v19 = vmul.f32 %v2223_v28, %v798_v21 }
 0x1da   : > { %v874_v26 = vmul.f32 %v2225_v10, %v799_v35  ;;  %1008 = vst [vmem:[%s2243_s21 + $0x1d0] sm:$0xff] %v944_v1 }
 0x1db   : > { %1009 = vst [vmem:[%s2243_s21 + $0x1d8] sm:$0xff] %v945_v17  ;;  %1010 = vst [vmem:[%s2243_s21 + $0x1e0] sm:$0xff] %v946_v40  ;;  %v948_v44 = vadd.f32 %v2227_v62, %v873_v19 }
 0x1dc   : > { %1011 = vst [vmem:[%s2243_s21 + $0x1e8] sm:$0xff] %v947_v22  ;;  %v949_v28 = vadd.f32 %v2229_v45, %v874_v26 }
 0x1dd   : > { %1012 = vst [vmem:[%s2243_s21 + $0x1f0] sm:$0xff] %v948_v44 }
 0x1de   : > { %1013 = vst [vmem:[%s2243_s21 + $0x1f8] sm:$0xff] %v949_v28 }
 0x1df   : > { %1372 = shalt.err (!%p1369_p2)
}
 0x1e0   : > { %s1373_s4 = scalar_lea.hbm %s2490_s28, 8192  ;;  %s1377_s27 = scalar_lea.hbm %s2549_s2, 16384 }
 0x1e1   : > { %p1374_p9 = scmp.ne.s32.totalorder %s2490_s28, %s1373_s4  ;;  %p1378_p6 = scmp.lt.u32.totalorder %s2490_s28, %s2549_s2 }
 0x1e2   : > { %p1379_p4 = scmp.lt.u32.totalorder %s1377_s27, %s1373_s4  ;;  %p1381_p0 = scmp.lt.u32.totalorder %s1373_s4, %s2490_s28 }
 0x1e3   : > { %p1375_p11 = pnand %p1374_p9, %p2666_p5 }
 0x1e4   : > { %p1380_p8 = por %p1379_p4, %p1378_p6 }
 0x1e5   : > { %p1376_p3 = pneg %p1375_p11 }
 0x1e6   : > { %p1382_p7 = por %p1381_p0, %p1380_p8 }
 0x1e8   : > { %p1383_p13 = pnand %p1382_p7, %p1376_p3 }
 0x1ea   : > { %1386 = shalt.err (!%p1383_p13)
}
 0x1eb   : > { %s1452_s29 = smov 256   ;;  %s1453_s21 = smov 16  }
 0x1ec   : > { %1168 = dma.vmem_to_hbm [thread:$0]  (%p2666_p5), %s2492_s19, 8192, %s2490_s28, %s1015_s3, %s1452_s29, %s1452_s29, %s1453_s21  }
 0x1ed PF: > { %s1046_s16 = sand.u32 1, %s1425_s9   ;;  %p2667_p10 = scmp.ne.s32.totalorder %s2590_s24, 0 }
 0x1ee   : > { %p2668_p12 = scmp.ge.s32.totalorder %s1445_s14, 2  ;;  %s1047_s12 = scalar_lea.sflag [#allocation4], %s1046_s16 }
 0x1f0   : > { %p1178_p1 = pnand %p2668_p12, %p2667_p10 }
 0x1f2   : > { %1420 = dma.done.wait (!%p1178_p1), %s1047_s12, 8192  }
 0x1f3   : > { %1422 = vsyncadd (!%p1178_p1), %s1047_s12, 4294959104  ;;  %s21_s14 = sadd.s32 1, %s1445_s14   ;;  %s2669_s9 = smov %s1429_s10 }
 0x1f4   : > { %p18_p2 = scmp.ge.s32.totalorder %s21_s14, 4   ;;  %s2670_s10 = smov %s1433_s11 }
 0x1f5   : > { %s2671_s11 = smov %s1525_s23  ;;  %s2672_s12 = smov %s1441_s13 }
 0x1f6   : > { %s2673_s13 = smov %s2675_s17  ;;  %20 = sbr.rel (!%p18_p2) target bundleno = 8 (0x8), region = 87 }
 0x1fd   :  { %1052 = vsyncpa [#allocation3], 1 }
 0x1fe   :  { %1054 = vsyncpa [#allocation3 + $0x1], 1 }
 0x1ff   :  { %1055 = vsyncpa [#allocation6], 1 }
 0x200   :  { %1057 = vsyncpa [#allocation6 + $0x1], 1 }
 0x201   :  { %1058 = vsyncpa [#allocation4], 1 }
 0x202   :  { %1060 = vsyncpa [#allocation4 + $0x1], 1 }

</bundles_post_ra>
